<compile_context>
chip_gen: v7x
topology: tpu7x:2x2x1
jax: 0.10.0
libtpu: 0.0.40
codegen_flags: <defaults>
</compile_context>

<pallas_src>
import functools

import jax
import jax.numpy as jnp
from jax import lax
from jax.experimental import pallas as pl
from jax.experimental.pallas import tpu as pltpu

C1, C2, K = 32, 64, 3          # conv1 out-ch, conv2 out-ch, kernel size
H1, NCLS = 128, 2              # fc1 hidden, number of classes
OUTP = 128                     # fc2 output padded to a full lane tile
BB = 8                         # batch elements per grid step (sublane-aligned)


def _shift_down(v, n):
    # value at position l-1 for row order r = l*n + b; zeros where l == 0.
    return jnp.concatenate(
        [jnp.zeros((n, v.shape[1]), v.dtype), v[:-n, :]], axis=0)


def _shift_up(v, n):
    # value at position l+1; zeros where l == L-1.
    return jnp.concatenate(
        [v[n:, :], jnp.zeros((n, v.shape[1]), v.dtype)], axis=0)


# ---------------------------------------------------------------------------
# Fused kernel: conv1+relu -> conv2+relu -> flatten -> fc1+relu -> fc2.
# One grid step handles BB batch elements.
# ---------------------------------------------------------------------------
def _cnn1d_kernel(L, x_ref, w1_ref, b1_ref, w2_ref, b2_ref,
                  wf1_ref, bf1_ref, wf2_ref, bf2_ref, out_ref):
    # x_ref:   (1, L*BB, 1)  rows ordered r = l*BB + b (length-major)
    # w1_ref:  (K, 1, C1)    w1_ref[k, 0, c] = conv1.weight[c, 0, k]
    # b1_ref:  (1, C1)
    # w2_ref:  (K*C1, C2)    w2_ref[k*C1+ci, co] = conv2.weight[co, ci, k]
    # b2_ref:  (1, C2)
    # wf1_ref: (L*C2, H1)    wf1_ref[l*C2+c, o] = fc1.weight[o, c*L+l]
    # bf1_ref: (1, H1)
    # wf2_ref: (H1, OUTP)    fc2.weight.T zero-padded to OUTP lanes
    # bf2_ref: (1, OUTP)
    # out_ref: (1, BB, OUTP)
    x = x_ref[0]                                          # (N, 1), N = L*BB
    x_m = _shift_down(x, BB)                              # x[l-1] (0 at l==0)
    x_p = _shift_up(x, BB)                                # x[l+1] (0 at l==L-1)

    # conv1 (in_ch == 1): 3-tap broadcast MAC on the VPU, bias + ReLU fused.
    h1 = (x_m * w1_ref[0] + x * w1_ref[1] + x_p * w1_ref[2]) + b1_ref[...]
    h1 = jnp.maximum(h1, 0.0)                             # (N, C1)

    # conv2 as one im2col matmul: (N, 3*C1) @ (3*C1, C2) on the MXU.
    h1_col = jnp.concatenate(
        [_shift_down(h1, BB), h1, _shift_up(h1, BB)], axis=1)   # (N, 96)
    h2 = jnp.dot(h1_col, w2_ref[...],
                 preferred_element_type=jnp.float32) + b2_ref[...]
    h2 = jnp.maximum(h2, 0.0)                             # (N, C2)

    # fc1: torch-flatten contraction sum_{c,l} h2[(l,b),c] * Wfc1[o, c*L+l],
    # decomposed into L tile-aligned (BB,C2)@(C2,H1) partial matmuls so no
    # sublane<->lane reshape is needed. L is small & static -> fully unrolled.
    acc = jnp.zeros((BB, H1), jnp.float32)
    for l in range(L):
        acc = acc + jnp.dot(h2[l * BB:(l + 1) * BB, :],
                            wf1_ref[l * C2:(l + 1) * C2, :],
                            preferred_element_type=jnp.float32)
    h3 = jnp.maximum(acc + bf1_ref[...], 0.0)             # (BB, H1)

    # fc2 padded to 128 output lanes -> lane-dense unmasked store.
    out_ref[0] = jnp.dot(h3, wf2_ref[...],
                         preferred_element_type=jnp.float32) + bf2_ref[...]


# ---------------------------------------------------------------------------
# Wrapper: batch padding + length-major packing + weight re-layout (tiny, one
# XLA op each; in a real model the weight permutations are precomputed once).
# ---------------------------------------------------------------------------
def cnn1d_forward(x, p):
    B, _, L = x.shape
    nb = pl.cdiv(B, BB)
    Bp = nb * BB
    N = L * BB

    x2 = x.reshape(B, L)
    if Bp != B:
        x2 = jnp.pad(x2, ((0, Bp - B), (0, 0)))
    # rows ordered r = l*BB + b within each batch block
    x_lb = x2.reshape(nb, BB, L).transpose(0, 2, 1).reshape(nb, N, 1)

    w1c = p["w1"][:, 0, :].T.reshape(K, 1, C1)                       # (K,1,C1)
    w2c = p["w2"].transpose(2, 1, 0).reshape(K * C1, C2)             # (96,C2)
    wf1p = (p["wfc1"].reshape(H1, C2, L).transpose(2, 1, 0)
            .reshape(L * C2, H1))                                    # (L*C2,H1)
    wf2p = jnp.zeros((H1, OUTP), jnp.float32).at[:, :NCLS].set(p["wfc2"].T)
    bf2p = jnp.zeros((1, OUTP), jnp.float32).at[:, :NCLS].set(p["bfc2"][None, :])

    out = pl.pallas_call(
        functools.partial(_cnn1d_kernel, L),
        out_shape=jax.ShapeDtypeStruct((nb, BB, OUTP), jnp.float32),
        grid_spec=pltpu.PrefetchScalarGridSpec(
            num_scalar_prefetch=0,
            grid=(nb,),
            in_specs=[
                pl.BlockSpec((1, N, 1), lambda g: (g, 0, 0)),
                pl.BlockSpec((K, 1, C1), lambda g: (0, 0, 0)),
                pl.BlockSpec((1, C1), lambda g: (0, 0)),
                pl.BlockSpec((K * C1, C2), lambda g: (0, 0)),
                pl.BlockSpec((1, C2), lambda g: (0, 0)),
                pl.BlockSpec((L * C2, H1), lambda g: (0, 0)),
                pl.BlockSpec((1, H1), lambda g: (0, 0)),
                pl.BlockSpec((H1, OUTP), lambda g: (0, 0)),
                pl.BlockSpec((1, OUTP), lambda g: (0, 0)),
            ],
            out_specs=pl.BlockSpec((1, BB, OUTP), lambda g: (g, 0, 0)),
        ),
        compiler_params=pltpu.CompilerParams(
            dimension_semantics=("parallel",)),
    )(x_lb, w1c, p["b1"].reshape(1, C1), w2c, p["b2"].reshape(1, C2),
      wf1p, p["bfc1"].reshape(1, H1), wf2p, bf2p)

    return out.reshape(Bp, OUTP)[:B, :NCLS]


# ---------------------------------------------------------------------------
# Parameter init (deterministic, PyTorch-default-style uniform bounds).
# ---------------------------------------------------------------------------
def init_params(key, input_size):
    ks = jax.random.split(key, 8)

    def unif(k, shape, fan_in):
        bound = 1.0 / jnp.sqrt(jnp.float32(fan_in))
        return jax.random.uniform(k, shape, jnp.float32, -bound, bound)

    return dict(
        w1=unif(ks[0], (C1, 1, K), 1 * K),                   # Conv1d (O, I, K)
        b1=unif(ks[1], (C1,), 1 * K),
        w2=unif(ks[2], (C2, C1, K), C1 * K),
        b2=unif(ks[3], (C2,), C1 * K),
        wfc1=unif(ks[4], (H1, C2 * input_size), C2 * input_size),  # (out, in)
        bfc1=unif(ks[5], (H1,), C2 * input_size),
        wfc2=unif(ks[6], (NCLS, H1), H1),
        bfc2=unif(ks[7], (NCLS,), H1),
    )


# Pure-JAX reference for correctness checking.
def ref_forward(x, p):
    dn = ("NCH", "OIH", "NCH")
    h = lax.conv_general_dilated(x, p["w1"], (1,), [(1, 1)],
                                 dimension_numbers=dn) + p["b1"][None, :, None]
    h = jnp.maximum(h, 0.0)
    h = lax.conv_general_dilated(h, p["w2"], (1,), [(1, 1)],
                                 dimension_numbers=dn) + p["b2"][None, :, None]
    h = jnp.maximum(h, 0.0)
    h = h.reshape(x.shape[0], -1)
    h = jnp.maximum(h @ p["wfc1"].T + p["bfc1"], 0.0)
    return h @ p["wfc2"].T + p["bfc2"]


if __name__ == "__main__":
    B, L = 2, 16                                  # batch=2, input_size=16
    key = jax.random.PRNGKey(0)
    k_x, k_p = jax.random.split(key)
    x = jax.random.normal(k_x, (B, 1, L), jnp.float32)
    params = init_params(k_p, L)

    out = jax.block_until_ready(cnn1d_forward(x, params))
    ref = jax.block_until_ready(ref_forward(x, params))

    assert out.shape == (B, NCLS), out.shape
    assert jnp.allclose(out, ref, atol=2e-4, rtol=2e-4), (out, ref)
    print("KERNEL_OK")
</pallas_src>

<mosaic_0001>
module attributes {stable_mosaic.version = 11 : i64} {
  func.func @_cnn1d_kernel(%arg0: i32, %arg1: memref<1x128x1xf32, #tpu.memory_space<vmem>>, %arg2: memref<3x1x32xf32, #tpu.memory_space<vmem>>, %arg3: memref<1x32xf32, #tpu.memory_space<vmem>>, %arg4: memref<96x64xf32, #tpu.memory_space<vmem>>, %arg5: memref<1x64xf32, #tpu.memory_space<vmem>>, %arg6: memref<1024x128xf32, #tpu.memory_space<vmem>>, %arg7: memref<1x128xf32, #tpu.memory_space<vmem>>, %arg8: memref<128x128xf32, #tpu.memory_space<vmem>>, %arg9: memref<1x128xf32, #tpu.memory_space<vmem>>, %arg10: memref<1x8x128xf32, #tpu.memory_space<vmem>>) attributes {dimension_semantics = [#tpu.dimension_semantics<parallel>], iteration_bounds = array<i64: 1>, scalar_prefetch = 0 : i64, scratch_operands = 0 : i64, tpu.core_type = #tpu.core_type<tc>, window_params = [{transform_indices = @transform_0, window_bounds = array<i64: 1, 128, 1>}, {pipeline_mode = #tpu.pipeline_mode<synchronous>, transform_indices = @transform_1, window_bounds = array<i64: 3, 1, 32>}, {pipeline_mode = #tpu.pipeline_mode<synchronous>, transform_indices = @transform_2, window_bounds = array<i64: 1, 32>}, {pipeline_mode = #tpu.pipeline_mode<synchronous>, transform_indices = @transform_3, window_bounds = array<i64: 96, 64>}, {pipeline_mode = #tpu.pipeline_mode<synchronous>, transform_indices = @transform_4, window_bounds = array<i64: 1, 64>}, {pipeline_mode = #tpu.pipeline_mode<synchronous>, transform_indices = @transform_5, window_bounds = array<i64: 1024, 128>}, {pipeline_mode = #tpu.pipeline_mode<synchronous>, transform_indices = @transform_6, window_bounds = array<i64: 1, 128>}, {pipeline_mode = #tpu.pipeline_mode<synchronous>, transform_indices = @transform_7, window_bounds = array<i64: 128, 128>}, {pipeline_mode = #tpu.pipeline_mode<synchronous>, transform_indices = @transform_8, window_bounds = array<i64: 1, 128>}, {transform_indices = @transform_9, window_bounds = array<i64: 1, 8, 128>}]} {
    %c0 = arith.constant 0 : index
    %c0_0 = arith.constant 0 : index
    %c0_1 = arith.constant 0 : index
    %0 = vector.load %arg1[%c0, %c0_0, %c0_1] : memref<1x128x1xf32, #tpu.memory_space<vmem>>, vector<1x128x1xf32>
    %1 = vector.shape_cast %0 : vector<1x128x1xf32> to vector<128x1xf32>
    %cst = arith.constant 0.000000e+00 : f32
    %2 = vector.broadcast %cst : f32 to vector<8x1xf32>
    %3 = vector.extract_strided_slice %1 {offsets = [0, 0], sizes = [120, 1], strides = [1, 1]} : vector<128x1xf32> to vector<120x1xf32>
    %4 = tpu.concatenate %2, %3 in 0 : vector<8x1xf32>, vector<120x1xf32> -> vector<128x1xf32>
    %5 = vector.extract_strided_slice %1 {offsets = [8, 0], sizes = [120, 1], strides = [1, 1]} : vector<128x1xf32> to vector<120x1xf32>
    %cst_2 = arith.constant 0.000000e+00 : f32
    %6 = vector.broadcast %cst_2 : f32 to vector<8x1xf32>
    %7 = tpu.concatenate %5, %6 in 0 : vector<120x1xf32>, vector<8x1xf32> -> vector<128x1xf32>
    %c0_3 = arith.constant 0 : index
    %c0_4 = arith.constant 0 : index
    %c0_5 = arith.constant 0 : index
    %8 = vector.load %arg2[%c0_3, %c0_4, %c0_5] : memref<3x1x32xf32, #tpu.memory_space<vmem>>, vector<1x1x32xf32>
    %9 = vector.shape_cast %8 : vector<1x1x32xf32> to vector<1x32xf32>
    %10 = vector.broadcast %4 : vector<128x1xf32> to vector<128x32xf32>
    %11 = vector.broadcast %9 : vector<1x32xf32> to vector<128x32xf32>
    %12 = arith.mulf %10, %11 : vector<128x32xf32>
    %c1 = arith.constant 1 : index
    %c0_6 = arith.constant 0 : index
    %c0_7 = arith.constant 0 : index
    %13 = vector.load %arg2[%c1, %c0_6, %c0_7] : memref<3x1x32xf32, #tpu.memory_space<vmem>>, vector<1x1x32xf32>
    %14 = vector.shape_cast %13 : vector<1x1x32xf32> to vector<1x32xf32>
    %15 = vector.broadcast %1 : vector<128x1xf32> to vector<128x32xf32>
    %16 = vector.broadcast %14 : vector<1x32xf32> to vector<128x32xf32>
    %17 = arith.mulf %15, %16 : vector<128x32xf32>
    %18 = arith.addf %12, %17 : vector<128x32xf32>
    %c2 = arith.constant 2 : index
    %c0_8 = arith.constant 0 : index
    %c0_9 = arith.constant 0 : index
    %19 = vector.load %arg2[%c2, %c0_8, %c0_9] : memref<3x1x32xf32, #tpu.memory_space<vmem>>, vector<1x1x32xf32>
    %20 = vector.shape_cast %19 : vector<1x1x32xf32> to vector<1x32xf32>
    %21 = vector.broadcast %7 : vector<128x1xf32> to vector<128x32xf32>
    %22 = vector.broadcast %20 : vector<1x32xf32> to vector<128x32xf32>
    %23 = arith.mulf %21, %22 : vector<128x32xf32>
    %24 = arith.addf %18, %23 : vector<128x32xf32>
    %c0_10 = arith.constant 0 : index
    %c0_11 = arith.constant 0 : index
    %25 = vector.load %arg3[%c0_10, %c0_11] : memref<1x32xf32, #tpu.memory_space<vmem>>, vector<1x32xf32>
    %26 = vector.broadcast %25 : vector<1x32xf32> to vector<128x32xf32>
    %27 = arith.addf %24, %26 : vector<128x32xf32>
    %cst_12 = arith.constant 0.000000e+00 : f32
    %28 = vector.broadcast %cst_12 : f32 to vector<128x32xf32>
    %29 = arith.maximumf %27, %28 : vector<128x32xf32>
    %cst_13 = arith.constant 0.000000e+00 : f32
    %30 = vector.broadcast %cst_13 : f32 to vector<8x32xf32>
    %31 = vector.extract_strided_slice %29 {offsets = [0, 0], sizes = [120, 32], strides = [1, 1]} : vector<128x32xf32> to vector<120x32xf32>
    %32 = tpu.concatenate %30, %31 in 0 : vector<8x32xf32>, vector<120x32xf32> -> vector<128x32xf32>
    %33 = vector.extract_strided_slice %29 {offsets = [8, 0], sizes = [120, 32], strides = [1, 1]} : vector<128x32xf32> to vector<120x32xf32>
    %cst_14 = arith.constant 0.000000e+00 : f32
    %34 = vector.broadcast %cst_14 : f32 to vector<8x32xf32>
    %35 = tpu.concatenate %33, %34 in 0 : vector<120x32xf32>, vector<8x32xf32> -> vector<128x32xf32>
    %36 = tpu.concatenate %32, %29, %35 in 1 : vector<128x32xf32>, vector<128x32xf32>, vector<128x32xf32> -> vector<128x96xf32>
    %c0_15 = arith.constant 0 : index
    %c0_16 = arith.constant 0 : index
    %37 = vector.load %arg4[%c0_15, %c0_16] : memref<96x64xf32, #tpu.memory_space<vmem>>, vector<96x64xf32>
    %cst_17 = arith.constant dense<0.000000e+00> : vector<128x64xf32>
    %38 = tpu.matmul %36, %37, %cst_17 {dimension_numbers = #tpu.dot_dimension_numbers<[1], [0], [0], [1], [0, 0, 1, 1], [], []>} : vector<128x96xf32>, vector<96x64xf32>, vector<128x64xf32> -> vector<128x64xf32>
    %c0_18 = arith.constant 0 : index
    %c0_19 = arith.constant 0 : index
    %39 = vector.load %arg5[%c0_18, %c0_19] : memref<1x64xf32, #tpu.memory_space<vmem>>, vector<1x64xf32>
    %40 = vector.broadcast %39 : vector<1x64xf32> to vector<128x64xf32>
    %41 = arith.addf %38, %40 : vector<128x64xf32>
    %cst_20 = arith.constant 0.000000e+00 : f32
    %42 = vector.broadcast %cst_20 : f32 to vector<128x64xf32>
    %43 = arith.maximumf %41, %42 : vector<128x64xf32>
    %cst_21 = arith.constant 0.000000e+00 : f32
    %44 = vector.broadcast %cst_21 : f32 to vector<8x128xf32>
    %45 = vector.extract_strided_slice %43 {offsets = [0, 0], sizes = [8, 64], strides = [1, 1]} : vector<128x64xf32> to vector<8x64xf32>
    %c0_22 = arith.constant 0 : index
    %c0_23 = arith.constant 0 : index
    %46 = vector.load %arg6[%c0_22, %c0_23] : memref<1024x128xf32, #tpu.memory_space<vmem>>, vector<64x128xf32>
    %cst_24 = arith.constant dense<0.000000e+00> : vector<8x128xf32>
    %47 = tpu.matmul %45, %46, %cst_24 {dimension_numbers = #tpu.dot_dimension_numbers<[1], [0], [0], [1], [0, 0, 1, 1], [], []>} : vector<8x64xf32>, vector<64x128xf32>, vector<8x128xf32> -> vector<8x128xf32>
    %48 = arith.addf %44, %47 : vector<8x128xf32>
    %49 = vector.extract_strided_slice %43 {offsets = [8, 0], sizes = [8, 64], strides = [1, 1]} : vector<128x64xf32> to vector<8x64xf32>
    %c64 = arith.constant 64 : index
    %c0_25 = arith.constant 0 : index
    %50 = vector.load %arg6[%c64, %c0_25] : memref<1024x128xf32, #tpu.memory_space<vmem>>, vector<64x128xf32>
    %cst_26 = arith.constant dense<0.000000e+00> : vector<8x128xf32>
    %51 = tpu.matmul %49, %50, %cst_26 {dimension_numbers = #tpu.dot_dimension_numbers<[1], [0], [0], [1], [0, 0, 1, 1], [], []>} : vector<8x64xf32>, vector<64x128xf32>, vector<8x128xf32> -> vector<8x128xf32>
    %52 = arith.addf %48, %51 : vector<8x128xf32>
    %53 = vector.extract_strided_slice %43 {offsets = [16, 0], sizes = [8, 64], strides = [1, 1]} : vector<128x64xf32> to vector<8x64xf32>
    %c128 = arith.constant 128 : index
    %c0_27 = arith.constant 0 : index
    %54 = vector.load %arg6[%c128, %c0_27] : memref<1024x128xf32, #tpu.memory_space<vmem>>, vector<64x128xf32>
    %cst_28 = arith.constant dense<0.000000e+00> : vector<8x128xf32>
    %55 = tpu.matmul %53, %54, %cst_28 {dimension_numbers = #tpu.dot_dimension_numbers<[1], [0], [0], [1], [0, 0, 1, 1], [], []>} : vector<8x64xf32>, vector<64x128xf32>, vector<8x128xf32> -> vector<8x128xf32>
    %56 = arith.addf %52, %55 : vector<8x128xf32>
    %57 = vector.extract_strided_slice %43 {offsets = [24, 0], sizes = [8, 64], strides = [1, 1]} : vector<128x64xf32> to vector<8x64xf32>
    %c192 = arith.constant 192 : index
    %c0_29 = arith.constant 0 : index
    %58 = vector.load %arg6[%c192, %c0_29] : memref<1024x128xf32, #tpu.memory_space<vmem>>, vector<64x128xf32>
    %cst_30 = arith.constant dense<0.000000e+00> : vector<8x128xf32>
    %59 = tpu.matmul %57, %58, %cst_30 {dimension_numbers = #tpu.dot_dimension_numbers<[1], [0], [0], [1], [0, 0, 1, 1], [], []>} : vector<8x64xf32>, vector<64x128xf32>, vector<8x128xf32> -> vector<8x128xf32>
    %60 = arith.addf %56, %59 : vector<8x128xf32>
    %61 = vector.extract_strided_slice %43 {offsets = [32, 0], sizes = [8, 64], strides = [1, 1]} : vector<128x64xf32> to vector<8x64xf32>
    %c256 = arith.constant 256 : index
    %c0_31 = arith.constant 0 : index
    %62 = vector.load %arg6[%c256, %c0_31] : memref<1024x128xf32, #tpu.memory_space<vmem>>, vector<64x128xf32>
    %cst_32 = arith.constant dense<0.000000e+00> : vector<8x128xf32>
    %63 = tpu.matmul %61, %62, %cst_32 {dimension_numbers = #tpu.dot_dimension_numbers<[1], [0], [0], [1], [0, 0, 1, 1], [], []>} : vector<8x64xf32>, vector<64x128xf32>, vector<8x128xf32> -> vector<8x128xf32>
    %64 = arith.addf %60, %63 : vector<8x128xf32>
    %65 = vector.extract_strided_slice %43 {offsets = [40, 0], sizes = [8, 64], strides = [1, 1]} : vector<128x64xf32> to vector<8x64xf32>
    %c320 = arith.constant 320 : index
    %c0_33 = arith.constant 0 : index
    %66 = vector.load %arg6[%c320, %c0_33] : memref<1024x128xf32, #tpu.memory_space<vmem>>, vector<64x128xf32>
    %cst_34 = arith.constant dense<0.000000e+00> : vector<8x128xf32>
    %67 = tpu.matmul %65, %66, %cst_34 {dimension_numbers = #tpu.dot_dimension_numbers<[1], [0], [0], [1], [0, 0, 1, 1], [], []>} : vector<8x64xf32>, vector<64x128xf32>, vector<8x128xf32> -> vector<8x128xf32>
    %68 = arith.addf %64, %67 : vector<8x128xf32>
    %69 = vector.extract_strided_slice %43 {offsets = [48, 0], sizes = [8, 64], strides = [1, 1]} : vector<128x64xf32> to vector<8x64xf32>
    %c384 = arith.constant 384 : index
    %c0_35 = arith.constant 0 : index
    %70 = vector.load %arg6[%c384, %c0_35] : memref<1024x128xf32, #tpu.memory_space<vmem>>, vector<64x128xf32>
    %cst_36 = arith.constant dense<0.000000e+00> : vector<8x128xf32>
    %71 = tpu.matmul %69, %70, %cst_36 {dimension_numbers = #tpu.dot_dimension_numbers<[1], [0], [0], [1], [0, 0, 1, 1], [], []>} : vector<8x64xf32>, vector<64x128xf32>, vector<8x128xf32> -> vector<8x128xf32>
    %72 = arith.addf %68, %71 : vector<8x128xf32>
    %73 = vector.extract_strided_slice %43 {offsets = [56, 0], sizes = [8, 64], strides = [1, 1]} : vector<128x64xf32> to vector<8x64xf32>
    %c448 = arith.constant 448 : index
    %c0_37 = arith.constant 0 : index
    %74 = vector.load %arg6[%c448, %c0_37] : memref<1024x128xf32, #tpu.memory_space<vmem>>, vector<64x128xf32>
    %cst_38 = arith.constant dense<0.000000e+00> : vector<8x128xf32>
    %75 = tpu.matmul %73, %74, %cst_38 {dimension_numbers = #tpu.dot_dimension_numbers<[1], [0], [0], [1], [0, 0, 1, 1], [], []>} : vector<8x64xf32>, vector<64x128xf32>, vector<8x128xf32> -> vector<8x128xf32>
    %76 = arith.addf %72, %75 : vector<8x128xf32>
    %77 = vector.extract_strided_slice %43 {offsets = [64, 0], sizes = [8, 64], strides = [1, 1]} : vector<128x64xf32> to vector<8x64xf32>
    %c512 = arith.constant 512 : index
    %c0_39 = arith.constant 0 : index
    %78 = vector.load %arg6[%c512, %c0_39] : memref<1024x128xf32, #tpu.memory_space<vmem>>, vector<64x128xf32>
    %cst_40 = arith.constant dense<0.000000e+00> : vector<8x128xf32>
    %79 = tpu.matmul %77, %78, %cst_40 {dimension_numbers = #tpu.dot_dimension_numbers<[1], [0], [0], [1], [0, 0, 1, 1], [], []>} : vector<8x64xf32>, vector<64x128xf32>, vector<8x128xf32> -> vector<8x128xf32>
    %80 = arith.addf %76, %79 : vector<8x128xf32>
    %81 = vector.extract_strided_slice %43 {offsets = [72, 0], sizes = [8, 64], strides = [1, 1]} : vector<128x64xf32> to vector<8x64xf32>
    %c576 = arith.constant 576 : index
    %c0_41 = arith.constant 0 : index
    %82 = vector.load %arg6[%c576, %c0_41] : memref<1024x128xf32, #tpu.memory_space<vmem>>, vector<64x128xf32>
    %cst_42 = arith.constant dense<0.000000e+00> : vector<8x128xf32>
    %83 = tpu.matmul %81, %82, %cst_42 {dimension_numbers = #tpu.dot_dimension_numbers<[1], [0], [0], [1], [0, 0, 1, 1], [], []>} : vector<8x64xf32>, vector<64x128xf32>, vector<8x128xf32> -> vector<8x128xf32>
    %84 = arith.addf %80, %83 : vector<8x128xf32>
    %85 = vector.extract_strided_slice %43 {offsets = [80, 0], sizes = [8, 64], strides = [1, 1]} : vector<128x64xf32> to vector<8x64xf32>
    %c640 = arith.constant 640 : index
    %c0_43 = arith.constant 0 : index
    %86 = vector.load %arg6[%c640, %c0_43] : memref<1024x128xf32, #tpu.memory_space<vmem>>, vector<64x128xf32>
    %cst_44 = arith.constant dense<0.000000e+00> : vector<8x128xf32>
    %87 = tpu.matmul %85, %86, %cst_44 {dimension_numbers = #tpu.dot_dimension_numbers<[1], [0], [0], [1], [0, 0, 1, 1], [], []>} : vector<8x64xf32>, vector<64x128xf32>, vector<8x128xf32> -> vector<8x128xf32>
    %88 = arith.addf %84, %87 : vector<8x128xf32>
    %89 = vector.extract_strided_slice %43 {offsets = [88, 0], sizes = [8, 64], strides = [1, 1]} : vector<128x64xf32> to vector<8x64xf32>
    %c704 = arith.constant 704 : index
    %c0_45 = arith.constant 0 : index
    %90 = vector.load %arg6[%c704, %c0_45] : memref<1024x128xf32, #tpu.memory_space<vmem>>, vector<64x128xf32>
    %cst_46 = arith.constant dense<0.000000e+00> : vector<8x128xf32>
    %91 = tpu.matmul %89, %90, %cst_46 {dimension_numbers = #tpu.dot_dimension_numbers<[1], [0], [0], [1], [0, 0, 1, 1], [], []>} : vector<8x64xf32>, vector<64x128xf32>, vector<8x128xf32> -> vector<8x128xf32>
    %92 = arith.addf %88, %91 : vector<8x128xf32>
    %93 = vector.extract_strided_slice %43 {offsets = [96, 0], sizes = [8, 64], strides = [1, 1]} : vector<128x64xf32> to vector<8x64xf32>
    %c768 = arith.constant 768 : index
    %c0_47 = arith.constant 0 : index
    %94 = vector.load %arg6[%c768, %c0_47] : memref<1024x128xf32, #tpu.memory_space<vmem>>, vector<64x128xf32>
    %cst_48 = arith.constant dense<0.000000e+00> : vector<8x128xf32>
    %95 = tpu.matmul %93, %94, %cst_48 {dimension_numbers = #tpu.dot_dimension_numbers<[1], [0], [0], [1], [0, 0, 1, 1], [], []>} : vector<8x64xf32>, vector<64x128xf32>, vector<8x128xf32> -> vector<8x128xf32>
    %96 = arith.addf %92, %95 : vector<8x128xf32>
    %97 = vector.extract_strided_slice %43 {offsets = [104, 0], sizes = [8, 64], strides = [1, 1]} : vector<128x64xf32> to vector<8x64xf32>
    %c832 = arith.constant 832 : index
    %c0_49 = arith.constant 0 : index
    %98 = vector.load %arg6[%c832, %c0_49] : memref<1024x128xf32, #tpu.memory_space<vmem>>, vector<64x128xf32>
    %cst_50 = arith.constant dense<0.000000e+00> : vector<8x128xf32>
    %99 = tpu.matmul %97, %98, %cst_50 {dimension_numbers = #tpu.dot_dimension_numbers<[1], [0], [0], [1], [0, 0, 1, 1], [], []>} : vector<8x64xf32>, vector<64x128xf32>, vector<8x128xf32> -> vector<8x128xf32>
    %100 = arith.addf %96, %99 : vector<8x128xf32>
    %101 = vector.extract_strided_slice %43 {offsets = [112, 0], sizes = [8, 64], strides = [1, 1]} : vector<128x64xf32> to vector<8x64xf32>
    %c896 = arith.constant 896 : index
    %c0_51 = arith.constant 0 : index
    %102 = vector.load %arg6[%c896, %c0_51] : memref<1024x128xf32, #tpu.memory_space<vmem>>, vector<64x128xf32>
    %cst_52 = arith.constant dense<0.000000e+00> : vector<8x128xf32>
    %103 = tpu.matmul %101, %102, %cst_52 {dimension_numbers = #tpu.dot_dimension_numbers<[1], [0], [0], [1], [0, 0, 1, 1], [], []>} : vector<8x64xf32>, vector<64x128xf32>, vector<8x128xf32> -> vector<8x128xf32>
    %104 = arith.addf %100, %103 : vector<8x128xf32>
    %105 = vector.extract_strided_slice %43 {offsets = [120, 0], sizes = [8, 64], strides = [1, 1]} : vector<128x64xf32> to vector<8x64xf32>
    %c960 = arith.constant 960 : index
    %c0_53 = arith.constant 0 : index
    %106 = vector.load %arg6[%c960, %c0_53] : memref<1024x128xf32, #tpu.memory_space<vmem>>, vector<64x128xf32>
    %cst_54 = arith.constant dense<0.000000e+00> : vector<8x128xf32>
    %107 = tpu.matmul %105, %106, %cst_54 {dimension_numbers = #tpu.dot_dimension_numbers<[1], [0], [0], [1], [0, 0, 1, 1], [], []>} : vector<8x64xf32>, vector<64x128xf32>, vector<8x128xf32> -> vector<8x128xf32>
    %108 = arith.addf %104, %107 : vector<8x128xf32>
    %c0_55 = arith.constant 0 : index
    %c0_56 = arith.constant 0 : index
    %109 = vector.load %arg7[%c0_55, %c0_56] : memref<1x128xf32, #tpu.memory_space<vmem>>, vector<1x128xf32>
    %110 = vector.broadcast %109 : vector<1x128xf32> to vector<8x128xf32>
    %111 = arith.addf %108, %110 : vector<8x128xf32>
    %cst_57 = arith.constant 0.000000e+00 : f32
    %112 = vector.broadcast %cst_57 : f32 to vector<8x128xf32>
    %113 = arith.maximumf %111, %112 : vector<8x128xf32>
    %c0_58 = arith.constant 0 : index
    %c0_59 = arith.constant 0 : index
    %114 = vector.load %arg8[%c0_58, %c0_59] : memref<128x128xf32, #tpu.memory_space<vmem>>, vector<128x128xf32>
    %cst_60 = arith.constant dense<0.000000e+00> : vector<8x128xf32>
    %115 = tpu.matmul %113, %114, %cst_60 {dimension_numbers = #tpu.dot_dimension_numbers<[1], [0], [0], [1], [0, 0, 1, 1], [], []>} : vector<8x128xf32>, vector<128x128xf32>, vector<8x128xf32> -> vector<8x128xf32>
    %c0_61 = arith.constant 0 : index
    %c0_62 = arith.constant 0 : index
    %116 = vector.load %arg9[%c0_61, %c0_62] : memref<1x128xf32, #tpu.memory_space<vmem>>, vector<1x128xf32>
    %117 = vector.broadcast %116 : vector<1x128xf32> to vector<8x128xf32>
    %118 = arith.addf %115, %117 : vector<8x128xf32>
    %c0_63 = arith.constant 0 : index
    %c0_64 = arith.constant 0 : index
    %c0_65 = arith.constant 0 : index
    %119 = vector.load %arg10[%c0_63, %c0_64, %c0_65] : memref<1x8x128xf32, #tpu.memory_space<vmem>>, vector<1x8x128xf32>
    %120 = vector.shape_cast %119 : vector<1x8x128xf32> to vector<8x128xf32>
    %121 = vector.shape_cast %118 : vector<8x128xf32> to vector<1x8x128xf32>
    tpu.vector_store %arg10[%c0_63, %c0_64, %c0_65], %121 {strides = array<i32>} : memref<1x8x128xf32, #tpu.memory_space<vmem>>, vector<1x8x128xf32>,
    return
  }
  func.func @transform_0(%arg0: i32) -> (i32, i32, i32) {
    %c0_i32 = arith.constant 0 : i32
    %c0_i32_0 = arith.constant 0 : i32
    %c0_i32_1 = arith.constant 0 : i32
    return %arg0, %c0_i32, %c0_i32_0 : i32, i32, i32
  }
  func.func @transform_1(%arg0: i32) -> (i32, i32, i32) {
    %c0_i32 = arith.constant 0 : i32
    %c0_i32_0 = arith.constant 0 : i32
    %c0_i32_1 = arith.constant 0 : i32
    %c0_i32_2 = arith.constant 0 : i32
    return %c0_i32, %c0_i32_0, %c0_i32_1 : i32, i32, i32
  }
  func.func @transform_2(%arg0: i32) -> (i32, i32) {
    %c0_i32 = arith.constant 0 : i32
    %c0_i32_0 = arith.constant 0 : i32
    %c0_i32_1 = arith.constant 0 : i32
    return %c0_i32, %c0_i32_0 : i32, i32
  }
  func.func @transform_3(%arg0: i32) -> (i32, i32) {
    %c0_i32 = arith.constant 0 : i32
    %c0_i32_0 = arith.constant 0 : i32
    %c0_i32_1 = arith.constant 0 : i32
    return %c0_i32, %c0_i32_0 : i32, i32
  }
  func.func @transform_4(%arg0: i32) -> (i32, i32) {
    %c0_i32 = arith.constant 0 : i32
    %c0_i32_0 = arith.constant 0 : i32
    %c0_i32_1 = arith.constant 0 : i32
    return %c0_i32, %c0_i32_0 : i32, i32
  }
  func.func @transform_5(%arg0: i32) -> (i32, i32) {
    %c0_i32 = arith.constant 0 : i32
    %c0_i32_0 = arith.constant 0 : i32
    %c0_i32_1 = arith.constant 0 : i32
    return %c0_i32, %c0_i32_0 : i32, i32
  }
  func.func @transform_6(%arg0: i32) -> (i32, i32) {
    %c0_i32 = arith.constant 0 : i32
    %c0_i32_0 = arith.constant 0 : i32
    %c0_i32_1 = arith.constant 0 : i32
    return %c0_i32, %c0_i32_0 : i32, i32
  }
  func.func @transform_7(%arg0: i32) -> (i32, i32) {
    %c0_i32 = arith.constant 0 : i32
    %c0_i32_0 = arith.constant 0 : i32
    %c0_i32_1 = arith.constant 0 : i32
    return %c0_i32, %c0_i32_0 : i32, i32
  }
  func.func @transform_8(%arg0: i32) -> (i32, i32) {
    %c0_i32 = arith.constant 0 : i32
    %c0_i32_0 = arith.constant 0 : i32
    %c0_i32_1 = arith.constant 0 : i32
    return %c0_i32, %c0_i32_0 : i32, i32
  }
  func.func @transform_9(%arg0: i32) -> (i32, i32, i32) {
    %c0_i32 = arith.constant 0 : i32
    %c0_i32_0 = arith.constant 0 : i32
    %c0_i32_1 = arith.constant 0 : i32
    return %arg0, %c0_i32, %c0_i32_0 : i32, i32, i32
  }
}

</mosaic_0001>

<bundles_post_ra>
// kernel: tpu_custom_call.1
= control target key start
LH: loop header
LB: loop body
LE: loop exit
PB: predicated region body
PF: predicated region fallthrough
CT: control target
= control target key end

     0   :  { %14 = vsyncpa [#allocation3], 0  ;;  %s3617_s0 = inlined_call_operand.vmem [shape: f32[1,128,1], index: 0, kind: input, shape index: {}]   ;;  %s3618_s1 = inlined_call_operand.vmem [shape: f32[3,1,32], index: 1, kind: input, shape index: {}]   ;;  %s3619_s2 = inlined_call_operand.vmem [shape: f32[1,32], index: 2, kind: input, shape index: {}]   ;;  %s3620_s3 = inlined_call_operand.vmem [shape: f32[96,64], index: 3, kind: input, shape index: {}]   ;;  %s3621_s4 = inlined_call_operand.vmem [shape: f32[1,64], index: 4, kind: input, shape index: {}]   ;;  %s3622_s5 = inlined_call_operand.hbm [shape: f32[1024,128], index: 5, kind: input, shape index: {}]   ;;  %s3623_s6 = inlined_call_operand.vmem [shape: f32[1,128], index: 6, kind: input, shape index: {}]   ;;  %s3624_s7 = inlined_call_operand.vmem [shape: f32[128,128], index: 7, kind: input, shape index: {}]   ;;  %s3625_s8 = inlined_call_operand.vmem [shape: f32[1,128], index: 8, kind: input, shape index: {}]   ;;  %s3626_s9 = inlined_call_operand.hbm [shape: f32[1,8,128], index: 9, kind: output, shape index: {}]  }
   0x1   :  { %15 = vsyncpa [#allocation4], 0  ;;  %s3010_s30 = smov [#allocation2]   ;;  %s2962_s13 = scalar_lea.hbm %s3622_s5, 16384 }
   0x2   :  { %s31_s10 = sshll.u32 %s3010_s30, 4  ;;  %p2963_p0 = scmp.ne.s32.totalorder %s3622_s5, %s2962_s13  ;;  %s32_s10 = int_to_ptr.vmem [resolvable:$true] %s31_s10 }
   0x3   :  { %p2966_p1 = scmp.lt.u32.totalorder %s2962_s13, %s3622_s5 }
   0x5   :  { %p2968_p2 = pnand %p2966_p1, %p2963_p0 }
   0x7   :  { %2971 = shalt.err (!%p2968_p2)
}
   0x8   :  { %s2972_s18 = scalar_lea.vmem %s32_s10, 16384  ;;  %p2977_p4 = scmp.lt.s32.totalorder %s32_s10, %s32_s10 }
   0x9   :  { %p2973_p3 = scmp.ne.s32.totalorder %s32_s10, %s2972_s18  ;;  %p2978_p5 = scmp.lt.s32.totalorder %s2972_s18, %s2972_s18 }
   0xb   :  { %p2979_p6 = por %p2978_p5, %p2977_p4 }
   0xd   :  { %p2980_p7 = pnand %p2979_p6, %p2973_p3 }
   0xf   :  { %2983 = shalt.err (!%p2980_p7)
}
  0x10   :  { %s3011_s19 = smov 128   ;;  %s3012_s20 = smov 8  }
  0x11   :  { %37 = dma.hbm_to_vmem [thread:$0]  %s3622_s5, 16384, %s32_s10, [#allocation3], %s3011_s19, %s3011_s19, %s3012_s20  }
  0x12   :  { %3006 = dma.done.wait [#allocation3], 16384  }
  0x13   :  { %3007 = vsyncadd [#allocation3], 4294950912  ;;  %v3013_v0 = vmov 0   ;;  %v49_v1 = vld [vmem:[%s3617_s0 + $0x10] sm:$0xff]  ;;  %v47_v2 = vld [vmem:[%s3617_s0] sm:$0xff]  ;;  %s3015_s11 = smov 64  }
  0x14   :  { %2961 = vset.pattern.permute.xlu1 %v3013_v0  ;;  %2960 = vset.pattern.permute.xlu0 %v3013_v0  ;;  %v50_v3 = vld [vmem:[%s3617_s0 + $0x18] sm:$0xff]  ;;  %v48_v4 = vld [vmem:[%s3617_s0 + $0x8] sm:$0xff]  ;;  %v51_v6 = vld [vmem:[%s3617_s0 + $0x20] sm:$0xff]  ;;  %vm402_vm0 = vcmask 261120   ;;  %vm419_vm1 = vcmask 523264   ;;  %vm455_vm2 = vcmask 785408  }
  0x15   :  { %81 = vperm.xlu1 %2961, %v49_v1   ;;  %71 = vperm.xlu0 %2960, %v47_v2   ;;  %v52_v5 = vld [vmem:[%s3617_s0 + $0x28] sm:$0xff]  ;;  %v54_v7 = vld [vmem:[%s3617_s0 + $0x38] sm:$0xff]  ;;  %v53_v8 = vld [vmem:[%s3617_s0 + $0x30] sm:$0xff]  ;;  %vm3018_vm3 = vmmov 0   ;;  %s3019_s28 = smov [#allocation5]  }
  0x16   :  { %v56_v9 = vld [vmem:[%s3617_s0 + $0x48] sm:$0xff]  ;;  %v55_v10 = vld [vmem:[%s3617_s0 + $0x40] sm:$0xff]  ;;  %v58_v11 = vld [vmem:[%s3617_s0 + $0x58] sm:$0xff]  ;;  %s2084_s5 = sshll.u32 %s3019_s28, 4  ;;  %s2085_s5 = int_to_ptr.vmem [resolvable:$true] %s2084_s5 }
  0x17   :  { %v57_v12 = vld [vmem:[%s3617_s0 + $0x50] sm:$0xff]  ;;  %v436_v13 = vld [vmem:[%s3620_s3] sm:$0xff]  ;;  %v437_v14 = vld [vmem:[%s3620_s3 + $0x8] sm:$0xff]  ;;  %s2984_s29 = scalar_lea.vmem %s2085_s5, 128  ;;  %p2989_p9 = scmp.lt.s32.totalorder %s2085_s5, %s2085_s5 }
  0x18   :  { %v438_v15 = vld [vmem:[%s3620_s3 + $0x10] sm:$0xff]  ;;  %v2710_v16 = vpack.c.bf16 %v437_v14, %v436_v13  ;;  %v439_v17 = vld [vmem:[%s3620_s3 + $0x18] sm:$0xff]  ;;  %v440_v19 = vld [vmem:[%s3620_s3 + $0x20] sm:$0xff]  ;;  %p2985_p8 = scmp.ne.s32.totalorder %s2085_s5, %s2984_s29  ;;  %p2990_p10 = scmp.lt.s32.totalorder %s2984_s29, %s2984_s29 }
  0x19   :  { %86 = vperm.xlu1 %2961, %v50_v3   ;;  %76 = vperm.xlu0 %2960, %v48_v4   ;;  %v2714_v18 = vpack.c.bf16 %v439_v17, %v438_v15  ;;  %v441_v20 = vld [vmem:[%s3620_s3 + $0x28] sm:$0xff]  ;;  %v442_v22 = vld [vmem:[%s3620_s3 + $0x30] sm:$0xff]  ;;  %v443_v23 = vld [vmem:[%s3620_s3 + $0x38] sm:$0xff] }
  0x1a   :  { %2711 = vmatprep.subr.bf16.mxu0 %v2710_v16  ;;  %v2718_v21 = vpack.c.bf16 %v441_v20, %v440_v19  ;;  %v2722_v24 = vpack.c.bf16 %v443_v23, %v442_v22  ;;  %v444_v25 = vld [vmem:[%s3620_s3 + $0x40] sm:$0xff]  ;;  %v445_v26 = vld [vmem:[%s3620_s3 + $0x48] sm:$0xff]  ;;  %v446_v36 = vld [vmem:[%s3620_s3 + $0x50] sm:$0xff]  ;;  %p2991_p11 = por %p2990_p10, %p2989_p9 }
  0x1b   :  { %2713 = vmatpush3.bf16.msra.mxu0 %v2710_v16  ;;  %v2726_v27 = vpack.c.bf16 %v445_v26, %v444_v25  ;;  %v3151_v28 = vld [vmem:[%s3618_s1] ss:$0 sm:$0xff]  ;;  %v3156_v29 = vld [vmem:[%s3618_s1 + $0x1] ss:$0 sm:$0xff]  ;;  %v3163_v34 = vld [vmem:[%s3618_s1 + $0x2] ss:$0 sm:$0xff] }
  0x1c   :  { %2715 = vmatprep.subr.bf16.mxu0 %v2714_v18  ;;  %v150_v32 = vmul.f32 0.0, %v3151_v28  ;;  %v447_v37 = vld [vmem:[%s3620_s3 + $0x58] sm:$0xff]  ;;  %v3181_v49 = vld [vmem:[%s3619_s2] ss:$0 sm:$0xff]  ;;  %s3014_s2 = smov 32   ;;  %v61_v25 = vld [vmem:[%s3617_s0 + $0x70] sm:$0xff]  ;;  %p2992_p12 = pnand %p2991_p11, %p2985_p8 }
  0x1d   :  { %96 = vperm.xlu1 %2961, %v52_v5   ;;  %91 = vperm.xlu0 %2960, %v51_v6   ;;  %v2730_v39 = vpack.c.bf16 %v447_v37, %v446_v36  ;;  %v59_v6 = vld [vmem:[%s3617_s0 + $0x60] sm:$0xff] }
  0x1f   :  { %2717 = vmatpush3.bf16.msra.mxu0 %v2714_v18 }
  0x20   :  { %2719 = vmatprep.subr.bf16.mxu0 %v2718_v21 }
  0x21   :  { %106 = vperm.xlu1 %2961, %v54_v7   ;;  %101 = vperm.xlu0 %2960, %v53_v8   ;;  %v60_v8 = vld [vmem:[%s3617_s0 + $0x68] sm:$0xff] }
  0x23   :  { %2721 = vmatpush3.bf16.msra.mxu0 %v2718_v21 }
  0x24   :  { %2723 = vmatprep.subr.bf16.mxu0 %v2722_v24 }
  0x25   :  { %116 = vperm.xlu1 %2961, %v56_v9   ;;  %111 = vperm.xlu0 %2960, %v55_v10  }
  0x27   :  { %2725 = vmatpush3.bf16.msra.mxu0 %v2722_v24 }
  0x28   :  { %2727 = vmatprep.subr.bf16.mxu0 %v2726_v27 }
  0x29   :  { %126 = vperm.xlu1 %2961, %v58_v11   ;;  %121 = vperm.xlu0 %2960, %v57_v12  }
  0x2b   :  { %2729 = vmatpush3.bf16.msra.mxu0 %v2726_v27 }
  0x2c   :  { %2731 = vmatprep.subr.bf16.mxu0 %v2730_v39 }
  0x2f   :  { %2733 = vmatpush3.bf16.msra.mxu0 %v2730_v39 }
  0x94   :  { %v82_v30 = vpop.permute.xlu1 %81  ;;  %v72_v31 = vpop.permute.xlu0 %71 }
  0x95   :  { %v179_v33 = vmul.f32 %v3156_v29, %v72_v31  ;;  %v181_v35 = vmul.f32 %v3156_v29, %v82_v30  ;;  %v220_v40 = vmul.f32 %v3163_v34, %v82_v30  ;;  %v151_v42 = vmul.f32 %v3151_v28, %v72_v31  ;;  %v62_v31 = vld [vmem:[%s3617_s0 + $0x78] sm:$0xff] }
  0x96   :  { %v153_v52 = vmul.f32 %v3151_v28, %v82_v30 }
  0x97   :  { %v195_v43 = vadd.f32 %v179_v33, %v150_v32 }
  0x98   :  { %v77_v38 = vpop.permute.xlu0 %76  ;;  %v87_v44 = vpop.permute.xlu1 %86 }
  0x99   :  { %v152_v41 = vmul.f32 %v3151_v28, %v77_v38  ;;  %v180_v45 = vmul.f32 %v3156_v29, %v77_v38  ;;  %v219_v46 = vmul.f32 %v3163_v34, %v77_v38  ;;  %v221_v47 = vmul.f32 %v3163_v34, %v87_v44 }
  0x9a   :  { %v182_v53 = vmul.f32 %v3156_v29, %v87_v44  ;;  %v154_v60 = vmul.f32 %v3151_v28, %v87_v44 }
  0x9b   :  { %v197_v48 = vadd.f32 %v181_v35, %v152_v41  ;;  %v196_v50 = vadd.f32 %v180_v45, %v151_v42  ;;  %v235_v51 = vadd.f32 %v219_v46, %v195_v43 }
  0x9c   :  { %v92_v56 = vpop.permute.xlu0 %91  ;;  %v198_v61 = vadd.f32 %v182_v53, %v153_v52  ;;  %v97_v2 = vpop.permute.xlu1 %96 }
  0x9d   :  { %v3186_v54 = vadd.f32 %v3181_v49, %v235_v51  ;;  %v236_v55 = vadd.f32 %v220_v40, %v196_v50  ;;  %v237_v57 = vadd.f32 %v221_v47, %v197_v48  ;;  %v183_v62 = vmul.f32 %v3156_v29, %v92_v56 }
  0x9e   :  { %v222_v63 = vmul.f32 %v3163_v34, %v92_v56  ;;  %v223_v7 = vmul.f32 %v3163_v34, %v97_v2  ;;  %v184_v12 = vmul.f32 %v3156_v29, %v97_v2  ;;  %v155_v13 = vmul.f32 %v3151_v28, %v92_v56 }
  0x9f   :  { %v274_v58 = vmax.f32 %v3186_v54, 0.0  ;;  %v259_v59 = vadd.f32 %v3181_v49, %v236_v55  ;;  %v260_v1 = vadd.f32 %v3181_v49, %v237_v57  ;;  %v199_v3 = vadd.f32 %v183_v62, %v154_v60 }
  0xa0   :  { %v238_v4 = vadd.f32 %v222_v63, %v198_v61  ;;  %v102_v11 = vpop.permute.xlu0 %101  ;;  %v156_v18 = vmul.f32 %v3151_v28, %v97_v2  ;;  %v200_v19 = vadd.f32 %v184_v12, %v155_v13  ;;  %v107_v20 = vpop.permute.xlu1 %106 }
  0xa1   :  { %306 = vrot.lane.b32.xlu0 %v274_v58, %s3014_s2  ;;  %v3196_v0 = vmax.f32 %v259_v59, 0.0  ;;  %v3203_v5 = vmax.f32 %v260_v1, 0.0  ;;  %v239_v10 = vadd.f32 %v223_v7, %v199_v3  ;;  %v185_v14 = vmul.f32 %v3156_v29, %v102_v11 }
  0xa2   :  { %v261_v9 = vadd.f32 %v3181_v49, %v238_v4  ;;  %v224_v15 = vmul.f32 %v3163_v34, %v102_v11  ;;  %v186_v26 = vmul.f32 %v3156_v29, %v107_v20  ;;  %v225_v27 = vmul.f32 %v3163_v34, %v107_v20 }
  0xa3   :  { %308 = vrot.lane.b32.xlu1 %v3196_v0, %s3014_s2  ;;  %v262_v17 = vadd.f32 %v3181_v49, %v239_v10  ;;  %v201_v21 = vadd.f32 %v185_v14, %v156_v18  ;;  %v157_v30 = vmul.f32 %v3151_v28, %v102_v11  ;;  %v158_v37 = vmul.f32 %v3151_v28, %v107_v20 }
  0xa4   :  { %v3221_v16 = vmax.f32 %v261_v9, 0.0  ;;  %v240_v22 = vadd.f32 %v224_v15, %v200_v19  ;;  %v112_v24 = vpop.permute.xlu0 %111  ;;  %v117_v39 = vpop.permute.xlu1 %116 }
  0xa5   :  { %354 = vrot.lane.b32.xlu0 %v3196_v0, %s3015_s11  ;;  %v3229_v23 = vmax.f32 %v262_v17, 0.0  ;;  %v187_v32 = vmul.f32 %v3156_v29, %v112_v24  ;;  %v226_v33 = vmul.f32 %v3163_v34, %v112_v24  ;;  %v241_v36 = vadd.f32 %v225_v27, %v201_v21 }
  0xa6   :  { %v263_v35 = vadd.f32 %v3181_v49, %v240_v22  ;;  %v202_v38 = vadd.f32 %v186_v26, %v157_v30  ;;  %v188_v45 = vmul.f32 %v3156_v29, %v117_v39  ;;  %v227_v46 = vmul.f32 %v3163_v34, %v117_v39 }
  0xa7   :  { %356 = vrot.lane.b32.xlu1 %v3203_v5, %s3015_s11  ;;  %v203_v40 = vadd.f32 %v187_v32, %v158_v37  ;;  %v264_v44 = vadd.f32 %v3181_v49, %v241_v36  ;;  %v159_v47 = vmul.f32 %v3151_v28, %v112_v24  ;;  %v160_v55 = vmul.f32 %v3151_v28, %v117_v39 }
  0xa8   :  { %v242_v41 = vadd.f32 %v226_v33, %v202_v38  ;;  %v122_v42 = vpop.permute.xlu0 %121  ;;  %v3248_v43 = vmax.f32 %v263_v35, 0.0  ;;  %v127_v57 = vpop.permute.xlu1 %126 }
  0xa9   :  { %131 = vperm.xlu0 %2960, %v59_v6   ;;  %v189_v48 = vmul.f32 %v3156_v29, %v122_v42  ;;  %v228_v50 = vmul.f32 %v3163_v34, %v122_v42  ;;  %v3260_v51 = vmax.f32 %v264_v44, 0.0  ;;  %v243_v53 = vadd.f32 %v227_v46, %v203_v40 }
  0xaa   :  { %v265_v52 = vadd.f32 %v3181_v49, %v242_v41  ;;  %v204_v56 = vadd.f32 %v188_v45, %v159_v47  ;;  %v229_v63 = vmul.f32 %v3163_v34, %v127_v57  ;;  %v190_v17 = vmul.f32 %v3156_v29, %v127_v57 }
  0xab   :  { %136 = vperm.xlu1 %2961, %v60_v8   ;;  %v205_v59 = vadd.f32 %v189_v48, %v160_v55  ;;  %v266_v62 = vadd.f32 %v3181_v49, %v243_v53  ;;  %v161_v18 = vmul.f32 %v3151_v28, %v122_v42  ;;  %v162_v20 = vmul.f32 %v3151_v28, %v127_v57 }
  0xac   :  { %v244_v60 = vadd.f32 %v228_v50, %v204_v56  ;;  %v3268_v61 = vmax.f32 %v265_v52, 0.0  ;;  %v234_v52 = vmul.f32 0.0, %v3163_v34 }
  0xad   :  { %310 = vrot.lane.b32.xlu0 %v3203_v5, %s3014_s2  ;;  %v3276_v1 = vmax.f32 %v266_v62, 0.0  ;;  %v245_v3 = vadd.f32 %v229_v63, %v205_v59  ;;  %v206_v21 = vadd.f32 %v190_v17, %v161_v18  ;;  %v666_v17 = vld [vmem:[#allocation2 + $0x8] sm:$0xff] }
  0xae   :  { %v267_v2 = vadd.f32 %v3181_v49, %v244_v60 }
  0xaf   :  { %312 = vrot.lane.b32.xlu1 %v3221_v16, %s3014_s2  ;;  %v268_v6 = vadd.f32 %v3181_v49, %v245_v3 }
  0xb0   :  { %v3283_v4 = vmax.f32 %v267_v2, 0.0 }
  0xb1   :  { %358 = vrot.lane.b32.xlu0 %v3221_v16, %s3015_s11  ;;  %v3290_v7 = vmax.f32 %v268_v6, 0.0 }
  0xb3   :  { %360 = vrot.lane.b32.xlu1 %v3229_v23, %s3015_s11 }
  0xb5   :  { %141 = vperm.xlu0 %2960, %v61_v25  }
  0xb7   :  { %170 = vperm.xlu1 %2961, %v62_v31  }
  0xb9   :  { %314 = vrot.lane.b32.xlu0 %v3229_v23, %s3014_s2 }
  0xbb   :  { %316 = vrot.lane.b32.xlu1 %v3248_v43, %s3014_s2 }
  0xbd   :  { %362 = vrot.lane.b32.xlu0 %v3248_v43, %s3015_s11 }
  0xbf   :  { %364 = vrot.lane.b32.xlu1 %v3260_v51, %s3015_s11 }
  0xc1   :  { %318 = vrot.lane.b32.xlu0 %v3260_v51, %s3014_s2 }
  0xc3   :  { %320 = vrot.lane.b32.xlu1 %v3268_v61, %s3014_s2 }
  0xc5   :  { %366 = vrot.lane.b32.xlu0 %v3268_v61, %s3015_s11 }
  0xc7   :  { %368 = vrot.lane.b32.xlu1 %v3276_v1, %s3015_s11 }
  0xc9   :  { %322 = vrot.lane.b32.xlu0 %v3276_v1, %s3014_s2 }
  0xcb   :  { %324 = vrot.lane.b32.xlu1 %v3283_v4, %s3014_s2 }
  0xcd   :  { %370 = vrot.lane.b32.xlu0 %v3283_v4, %s3015_s11 }
  0xcf   :  { %372 = vrot.lane.b32.xlu1 %v3290_v7, %s3015_s11 }
  0xd1   :  { %326 = vrot.lane.b32.xlu0 %v3290_v7, %s3014_s2 }
 0x113   :  { %v307_v8 = vpop.permute.xlu0 %306 }
 0x114   :  { %v403_v10 = vsel %vm402_vm0, 0.0, %v307_v8 }
 0x115   :  { %v309_v9 = vpop.permute.xlu1 %308 }
 0x116   :  { %v404_v13 = vsel %vm402_vm0, %v274_v58, %v309_v9 }
 0x117   :  { %v355_v11 = vpop.permute.xlu0 %354 }
 0x118   :  { %v420_v12 = vsel %vm419_vm1, %v403_v10, %v355_v11 }
 0x119   :  { %v357_v14 = vpop.permute.xlu1 %356  ;;  %2347 = vmatprep.mubr.msk.f32.mxu0 %vm455_vm2, %v420_v12  ;;  %v665_v12 = vld [vmem:[#allocation2] sm:$0xff] }
 0x11a   :  { %v421_v15 = vsel %vm419_vm1, %v404_v13, %v357_v14 }
 0x11b   :  { %2348 = vmatmul.mubr.msk.f32.vlgmr.msra.gmra.mrb[0].mxu0 %vm455_vm2, %v421_v15  ;;  %v3016_v15 = vmov 0.0|0.0  }
 0x11c   :  { %2734 = vmatprep.subr.bf16.mxu0 %v3016_v15  ;;  %2746 = vmatprep.subr.bf16.mxu1 %v3016_v15 }
 0x128   :  { %v132_v19 = vpop.permute.xlu0 %131 }
 0x129   :  { %v191_v22 = vmul.f32 %v3156_v29, %v132_v19  ;;  %v230_v54 = vmul.f32 %v3163_v34, %v132_v19 }
 0x12a   :  { %v137_v58 = vpop.permute.xlu1 %136 }
 0x12b   :  { %v207_v24 = vadd.f32 %v191_v22, %v162_v20  ;;  %v246_v25 = vadd.f32 %v230_v54, %v206_v21  ;;  %v231_v26 = vmul.f32 %v3163_v34, %v137_v58  ;;  %v192_v38 = vmul.f32 %v3156_v29, %v137_v58  ;;  %v675_v22 = vld [vmem:[#allocation2 + $0x50] sm:$0xff]  ;;  %v676_v54 = vld [vmem:[#allocation2 + $0x58] sm:$0xff] }
 0x12c   :  { %v311_v27 = vpop.permute.xlu0 %310  ;;  %v164_v45 = vmul.f32 %v3151_v28, %v137_v58  ;;  %v2747_v21 = vpack.c.bf16 %v666_v17, %v665_v12  ;;  %v667_v58 = vld [vmem:[#allocation2 + $0x10] sm:$0xff] }
 0x12d   :  { %v269_v30 = vadd.f32 %v3181_v49, %v246_v25  ;;  %v247_v31 = vadd.f32 %v231_v26, %v207_v24  ;;  %v405_v35 = vsel %vm402_vm0, %v3196_v0, %v311_v27  ;;  %v163_v0 = vmul.f32 %v3151_v28, %v132_v19  ;;  %v668_v24 = vld [vmem:[#allocation2 + $0x18] sm:$0xff] }
 0x12e   :  { %v313_v32 = vpop.permute.xlu1 %312  ;;  %2748 = vmatpush3.bf16.msra.mxu1 %v2747_v21  ;;  %v2750_v27 = vpack.c.bf16 %v668_v24, %v667_v58  ;;  %v909_v21 = vld [vmem:[#allocation2 + $0xc0] sm:$0xff]  ;;  %v828_v58 = vld [vmem:[#allocation2 + $0x88] sm:$0xff] }
 0x12f   :  { %v3311_v33 = vmax.f32 %v269_v30, 0.0  ;;  %v270_v37 = vadd.f32 %v3181_v49, %v247_v31  ;;  %v406_v40 = vsel %vm402_vm0, %v3203_v5, %v313_v32  ;;  %v208_v47 = vadd.f32 %v192_v38, %v163_v0  ;;  %2749 = vmatprep.subr.bf16.mxu1 %v3016_v15  ;;  %v677_v30 = vld [vmem:[#allocation2 + $0x60] sm:$0xff]  ;;  %v678_v31 = vld [vmem:[#allocation2 + $0x68] sm:$0xff] }
 0x130   :  { %v359_v36 = vpop.permute.xlu0 %358 }
 0x131   :  { %v422_v39 = vsel %vm419_vm1, %v405_v35, %v359_v36  ;;  %374 = vrot.lane.b32.xlu0 %v3311_v33, %s3015_s11  ;;  %328 = vrot.lane.b32.xlu1 %v3311_v33, %s3014_s2  ;;  %v3327_v44 = vmax.f32 %v270_v37, 0.0  ;;  %v669_v36 = vld [vmem:[#allocation2 + $0x20] sm:$0xff]  ;;  %v670_v37 = vld [vmem:[#allocation2 + $0x28] sm:$0xff] }
 0x132   :  { %v361_v41 = vpop.permute.xlu1 %360  ;;  %2350 = vmatprep.mubr.msk.f32.mxu0 %vm455_vm2, %v422_v39  ;;  %2751 = vmatpush3.bf16.msra.mxu1 %v2750_v27 }
 0x133   :  { %v423_v42 = vsel %vm419_vm1, %v406_v40, %v361_v41  ;;  %v2741_v41 = vpack.c.bf16 %v678_v31, %v677_v30  ;;  %2752 = vmatprep.subr.bf16.mxu1 %v3016_v15  ;;  %v911_v30 = vld [vmem:[#allocation2 + $0xd0] sm:$0xff]  ;;  %v912_v31 = vld [vmem:[#allocation2 + $0xd8] sm:$0xff] }
 0x134   :  { %2351 = vmatmul.mubr.msk.f32.gmra.mrb[2].mxu0 %vm455_vm2, %v423_v42  ;;  %v142_v46 = vpop.permute.xlu0 %141 }
 0x135   :  { %v193_v48 = vmul.f32 %v3156_v29, %v142_v46  ;;  %v232_v50 = vmul.f32 %v3163_v34, %v142_v46  ;;  %330 = vrot.lane.b32.xlu0 %v3327_v44, %s3014_s2  ;;  %376 = vrot.lane.b32.xlu1 %v3327_v44, %s3015_s11  ;;  %v165_v5 = vmul.f32 %v3151_v28, %v142_v46 }
 0x136   :  { %v171_v53 = vpop.permute.xlu1 %170 }
 0x137   :  { %v209_v55 = vadd.f32 %v193_v48, %v164_v45  ;;  %v248_v56 = vadd.f32 %v232_v50, %v208_v47  ;;  %v194_v57 = vmul.f32 %v3156_v29, %v171_v53  ;;  %v233_v59 = vmul.f32 %v3163_v34, %v171_v53  ;;  %v673_v29 = vld [vmem:[#allocation2 + $0x40] sm:$0xff]  ;;  %v674_v34 = vld [vmem:[#allocation2 + $0x48] sm:$0xff]  ;;  %v679_v53 = vld [vmem:[#allocation2 + $0x70] sm:$0xff] }
 0x138   :  { %v315_v60 = vpop.permute.xlu0 %314  ;;  %v3017_v45 = vmov 0.0  }
 0x139   :  { %v210_v62 = vadd.f32 %v194_v57, %v165_v5  ;;  %v249_v63 = vadd.f32 %v233_v59, %v209_v55  ;;  %v271_v2 = vadd.f32 %v3181_v49, %v248_v56  ;;  %v407_v9 = vsel %vm402_vm0, %v3221_v16, %v315_v60  ;;  %v680_v55 = vld [vmem:[#allocation2 + $0x78] sm:$0xff]  ;;  %v671_v57 = vld [vmem:[#allocation2 + $0x30] sm:$0xff]  ;;  %2406 = vmatprep.mubr.msk.f32.mxu1 %vm3018_vm3, %v3017_v45 }
 0x13a   :  { %v317_v3 = vpop.permute.xlu1 %316  ;;  %v2735_v16 = vpack.c.bf16 %v674_v34, %v673_v29  ;;  %v2744_v56 = vpack.c.bf16 %v680_v55, %v679_v53  ;;  %v1074_v53 = vld [vmem:[#allocation2 + $0x148] sm:$0xff] }
 0x13b   :  { %v250_v6 = vadd.f32 %v234_v52, %v210_v62  ;;  %v3342_v8 = vmax.f32 %v271_v2, 0.0  ;;  %v272_v28 = vadd.f32 %v3181_v49, %v249_v63  ;;  %v408_v13 = vsel %vm402_vm0, %v3229_v23, %v317_v3 }
 0x13c   :  { %v363_v10 = vpop.permute.xlu0 %362  ;;  %2736 = vmatpush3.bf16.msra.mxu0 %v2735_v16 }
 0x13d   :  { %v424_v11 = vsel %vm419_vm1, %v407_v9, %v363_v10  ;;  %378 = vrot.lane.b32.xlu0 %v3342_v8, %s3015_s11  ;;  %332 = vrot.lane.b32.xlu1 %v3342_v8, %s3014_s2  ;;  %v3357_v19 = vmax.f32 %v272_v28, 0.0  ;;  %v273_v20 = vadd.f32 %v3181_v49, %v250_v6  ;;  %v2738_v49 = vpack.c.bf16 %v676_v54, %v675_v22  ;;  %v910_v22 = vld [vmem:[#allocation2 + $0xc8] sm:$0xff] }
 0x13e   :  { %v365_v14 = vpop.permute.xlu1 %364  ;;  %2353 = vmatprep.mubr.msk.f32.mxu0 %vm455_vm2, %v424_v11  ;;  %2737 = vmatprep.subr.bf16.mxu0 %v3016_v15 }
 0x13f   :  { %v425_v18 = vsel %vm419_vm1, %v408_v13, %v365_v14  ;;  %v289_v26 = vmax.f32 %v273_v20, 0.0 }
 0x140   :  { %2354 = vmatmul.mubr.msk.f32.gmra.mrb[4].mxu0 %vm455_vm2, %v425_v18  ;;  %v319_v23 = vpop.permute.xlu0 %318 }
 0x141   :  { %334 = vrot.lane.b32.xlu0 %v3357_v19, %s3014_s2  ;;  %380 = vrot.lane.b32.xlu1 %v3357_v19, %s3015_s11  ;;  %v409_v32 = vsel %vm402_vm0, %v3248_v43, %v319_v23  ;;  %v2753_v43 = vpack.c.bf16 %v670_v37, %v669_v36  ;;  %v827_v23 = vld [vmem:[#allocation2 + $0x80] sm:$0xff]  ;;  %v830_v36 = vld [vmem:[#allocation2 + $0x98] sm:$0xff]  ;;  %v2774_v37 = vpack.c.bf16 %v912_v31, %v911_v30 }
 0x142   :  { %v321_v25 = vpop.permute.xlu1 %320  ;;  %2739 = vmatpush3.bf16.msra.mxu0 %v2738_v49  ;;  %v2771_v49 = vpack.c.bf16 %v910_v22, %v909_v21  ;;  %v2759_v27 = vpack.c.bf16 %v828_v58, %v827_v23  ;;  %v1238_v23 = vld [vmem:[#allocation2 + $0x1c8] sm:$0xff]  ;;  %v1240_v30 = vld [vmem:[#allocation2 + $0x1d8] sm:$0xff] }
 0x143   :  { %v410_v39 = vsel %vm402_vm0, %v3260_v51, %v321_v25  ;;  %2740 = vmatprep.subr.bf16.mxu0 %v3016_v15  ;;  %2754 = vmatpush3.bf16.msra.mxu1 %v2753_v43 }
 0x144   :  { %v367_v35 = vpop.permute.xlu0 %366  ;;  %2755 = vmatprep.subr.bf16.mxu1 %v3016_v15 }
 0x145   :  { %v426_v38 = vsel %vm419_vm1, %v409_v32, %v367_v35  ;;  %382 = vrot.lane.b32.xlu0 %v289_v26, %s3015_s11  ;;  %336 = vrot.lane.b32.xlu1 %v289_v26, %s3014_s2  ;;  %v829_v35 = vld [vmem:[#allocation2 + $0x90] sm:$0xff] }
 0x146   :  { %v369_v40 = vpop.permute.xlu1 %368  ;;  %2356 = vmatprep.mubr.msk.f32.mxu0 %vm455_vm2, %v426_v38  ;;  %2742 = vmatpush3.bf16.msra.mxu0 %v2741_v41  ;;  %v2762_v38 = vpack.c.bf16 %v830_v36, %v829_v35  ;;  %v831_v41 = vld [vmem:[#allocation2 + $0xa0] sm:$0xff]  ;;  %v1157_v35 = vld [vmem:[#allocation2 + $0x190] sm:$0xff]  ;;  %v1158_v36 = vld [vmem:[#allocation2 + $0x198] sm:$0xff] }
 0x147   :  { %v427_v0 = vsel %vm419_vm1, %v410_v39, %v369_v40  ;;  %2743 = vmatprep.subr.bf16.mxu0 %v3016_v15  ;;  %v913_v39 = vld [vmem:[#allocation2 + $0xe0] sm:$0xff]  ;;  %v914_v40 = vld [vmem:[#allocation2 + $0xe8] sm:$0xff] }
 0x148   :  { %2357 = vmatmul.mubr.msk.f32.gmra.mrb[6].mxu0 %vm455_vm2, %v427_v0  ;;  %v323_v42 = vpop.permute.xlu0 %322  ;;  %v832_v0 = vld [vmem:[#allocation2 + $0xa8] sm:$0xff]  ;;  %v2777_v43 = vpack.c.bf16 %v914_v40, %v913_v39  ;;  %v2810_v39 = vpack.c.bf16 %v1158_v36, %v1157_v35  ;;  %v1241_v40 = vld [vmem:[#allocation2 + $0x1e0] sm:$0xff] }
 0x149   :  { %384 = vrot.lane.b32.xlu1 %v3017_v45, %s3015_s11  ;;  %v411_v46 = vsel %vm402_vm0, %v3268_v61, %v323_v42  ;;  %v672_v61 = vld [vmem:[#allocation2 + $0x38] sm:$0xff]  ;;  %v2765_v42 = vpack.c.bf16 %v832_v0, %v831_v41  ;;  %v1242_v41 = vld [vmem:[#allocation2 + $0x1e8] sm:$0xff]  ;;  %v1159_v0 = vld [vmem:[#allocation2 + $0x1a0] sm:$0xff] }
 0x14a   :  { %v325_v51 = vpop.permute.xlu1 %324  ;;  %v2756_v59 = vpack.c.bf16 %v672_v61, %v671_v57  ;;  %2745 = vmatpush3.bf16.msra.mxu0 %v2744_v56  ;;  %v991_v56 = vld [vmem:[#allocation2 + $0x100] sm:$0xff]  ;;  %v992_v57 = vld [vmem:[#allocation2 + $0x108] sm:$0xff] }
 0x14b   :  { %v412_v50 = vsel %vm402_vm0, %v3276_v1, %v325_v51  ;;  %2770 = vmatprep.subr.bf16.mxu0 %v3016_v15  ;;  %v915_v51 = vld [vmem:[#allocation2 + $0xf0] sm:$0xff] }
 0x14c   :  { %v371_v47 = vpop.permute.xlu0 %370  ;;  %2757 = vmatpush3.bf16.msra.mxu1 %v2756_v59 }
 0x14d   :  { %v428_v48 = vsel %vm419_vm1, %v411_v46, %v371_v47  ;;  %2758 = vmatprep.subr.bf16.mxu1 %v3016_v15  ;;  %v916_v46 = vld [vmem:[#allocation2 + $0xf8] sm:$0xff]  ;;  %v833_v47 = vld [vmem:[#allocation2 + $0xb0] sm:$0xff] }
 0x14e   :  { %v373_v5 = vpop.permute.xlu1 %372  ;;  %2359 = vmatprep.mubr.msk.f32.mxu0 %vm455_vm2, %v428_v48  ;;  %v834_v48 = vld [vmem:[#allocation2 + $0xb8] sm:$0xff] }
 0x14f   :  { %v429_v52 = vsel %vm419_vm1, %v412_v50, %v373_v5  ;;  %v2780_v50 = vpack.c.bf16 %v916_v46, %v915_v51  ;;  %v2768_v5 = vpack.c.bf16 %v834_v48, %v833_v47  ;;  %v1243_v46 = vld [vmem:[#allocation2 + $0x1f0] sm:$0xff]  ;;  %v1244_v47 = vld [vmem:[#allocation2 + $0x1f8] sm:$0xff] }
 0x150   :  { %2360 = vmatmul.mubr.msk.f32.gmra.mrb[8].mxu0 %vm455_vm2, %v429_v52  ;;  %v327_v1 = vpop.permute.xlu0 %326  ;;  %v1073_v52 = vld [vmem:[#allocation2 + $0x140] sm:$0xff] }
 0x151   :  { %v413_v60 = vsel %vm402_vm0, %v3283_v4, %v327_v1 }
 0x1a3   :  { %v329_v62 = vpop.permute.xlu1 %328  ;;  %v375_v63 = vpop.permute.xlu0 %374 }
 0x1a4   :  { %v430_v2 = vsel %vm419_vm1, %v413_v60, %v375_v63  ;;  %v414_v3 = vsel %vm402_vm0, %v3290_v7, %v329_v62  ;;  %v2795_v60 = vpack.c.bf16 %v1074_v53, %v1073_v52  ;;  %v2783_v63 = vpack.c.bf16 %v992_v57, %v991_v56  ;;  %v1401_v57 = vld [vmem:[#allocation2 + $0x240] sm:$0xff] }
 0x1a5   :  { %2362 = vmatprep.mubr.msk.f32.mxu0 %vm455_vm2, %v430_v2  ;;  %v1075_v2 = vld [vmem:[#allocation2 + $0x150] sm:$0xff]  ;;  %v2828_v53 = vpack.c.bf16 %v1244_v47, %v1243_v46  ;;  %v1490_v46 = vld [vmem:[#allocation2 + $0x2b8] sm:$0xff] }
 0x1a7   :  { %v377_v6 = vpop.permute.xlu1 %376  ;;  %v331_v9 = vpop.permute.xlu0 %330 }
 0x1a8   :  { %v431_v28 = vsel %vm419_vm1, %v414_v3, %v377_v6  ;;  %v415_v10 = vsel %vm402_vm0, %v3311_v33, %v331_v9  ;;  %v1076_v3 = vld [vmem:[#allocation2 + $0x158] sm:$0xff] }
 0x1a9   :  { %2363 = vmatmul.mubr.msk.f32.gmra.mrb[10].mxu0 %vm455_vm2, %v431_v28  ;;  %v993_v28 = vld [vmem:[#allocation2 + $0x110] sm:$0xff]  ;;  %v994_v9 = vld [vmem:[#allocation2 + $0x118] sm:$0xff] }
 0x1af   :  { %v333_v11 = vpop.permute.xlu1 %332  ;;  %v379_v4 = vpop.permute.xlu0 %378 }
 0x1b0   :  { %v432_v29 = vsel %vm419_vm1, %v415_v10, %v379_v4  ;;  %v416_v34 = vsel %vm402_vm0, %v3327_v44, %v333_v11  ;;  %v2798_v10 = vpack.c.bf16 %v1076_v3, %v1075_v2  ;;  %v2786_v11 = vpack.c.bf16 %v994_v9, %v993_v28  ;;  %v1077_v4 = vld [vmem:[#allocation2 + $0x160] sm:$0xff]  ;;  %v1403_v3 = vld [vmem:[#allocation2 + $0x250] sm:$0xff] }
 0x1b1   :  { %2365 = vmatprep.mubr.msk.f32.mxu0 %vm455_vm2, %v432_v29  ;;  %v1078_v29 = vld [vmem:[#allocation2 + $0x168] sm:$0xff]  ;;  %v1321_v9 = vld [vmem:[#allocation2 + $0x210] sm:$0xff] }
 0x1b3   :  { %v381_v12 = vpop.permute.xlu1 %380  ;;  %v335_v7 = vpop.permute.xlu0 %334 }
 0x1b4   :  { %v433_v13 = vsel %vm419_vm1, %v416_v34, %v381_v12  ;;  %v417_v14 = vsel %vm402_vm0, %v3342_v8, %v335_v7  ;;  %v3425_v8 = vld [vmem:[%s3621_s4] ss:$0 sm:$0xff]  ;;  %v996_v12 = vld [vmem:[#allocation2 + $0x128] sm:$0xff]  ;;  %v2801_v7 = vpack.c.bf16 %v1078_v29, %v1077_v4 }
 0x1b5   :  { %2366 = vmatmul.mubr.msk.f32.gmra.mrb[12].mxu0 %vm455_vm2, %v433_v13  ;;  %v995_v34 = vld [vmem:[#allocation2 + $0x120] sm:$0xff] }
 0x1b6   :  { %v2789_v13 = vpack.c.bf16 %v996_v12, %v995_v34  ;;  %v1405_v29 = vld [vmem:[#allocation2 + $0x260] sm:$0xff]  ;;  %v1406_v34 = vld [vmem:[#allocation2 + $0x268] sm:$0xff] }
 0x1b7   :  { %v337_v16 = vpop.permute.xlu1 %336  ;;  %v383_v33 = vpop.permute.xlu0 %382  ;;  %v1323_v12 = vld [vmem:[#allocation2 + $0x220] sm:$0xff] }
 0x1b8   :  { %v434_v17 = vsel %vm419_vm1, %v417_v14, %v383_v33  ;;  %v418_v18 = vsel %vm402_vm0, %v3357_v19, %v337_v16  ;;  %v1079_v14 = vld [vmem:[#allocation2 + $0x170] sm:$0xff]  ;;  %v1080_v16 = vld [vmem:[#allocation2 + $0x178] sm:$0xff] }
 0x1b9   :  { %2368 = vmatprep.mubr.msk.f32.mxu0 %vm455_vm2, %v434_v17  ;;  %v997_v17 = vld [vmem:[#allocation2 + $0x130] sm:$0xff] }
 0x1bb   :  { %v385_v20 = vpop.permute.xlu1 %384 }
 0x1bc   :  { %v435_v44 = vsel %vm419_vm1, %v418_v18, %v385_v20  ;;  %v998_v18 = vld [vmem:[#allocation2 + $0x138] sm:$0xff] }
 0x1bd   :  { %2369 = vmatmul.mubr.msk.f32.gmra.mrb[14].mxu0 %vm455_vm2, %v435_v44  ;;  %v2804_v44 = vpack.c.bf16 %v1080_v16, %v1079_v14  ;;  %v2792_v22 = vpack.c.bf16 %v998_v18, %v997_v17  ;;  %v1407_v16 = vld [vmem:[#allocation2 + $0x270] sm:$0xff]  ;;  %v1326_v18 = vld [vmem:[#allocation2 + $0x238] sm:$0xff] }
 0x1be   :  { %2387 = vmatprep.mubr.msk.f32.mxu0 %vm3018_vm3, %v3017_v45  ;;  %v1325_v17 = vld [vmem:[#allocation2 + $0x230] sm:$0xff] }
 0x1ee   :  { %v2349_v54 = vpop.f32.mrb[0].mxu0 }
 0x1ef   :  { %v576_v19 = vadd.f32 %v2349_v54, %v3425_v8  ;;  %v570_v24 = vpop.f32.mrb[1].mxu0  ;;  %v1237_v54 = vld [vmem:[#allocation2 + $0x1c0] sm:$0xff] }
 0x1f0   :  { %v571_v25 = vadd.f32 %v3425_v8, %v570_v24  ;;  %v1156_v24 = vld [vmem:[#allocation2 + $0x188] sm:$0xff] }
 0x1f1   :  { %v650_v26 = vmax.f32 %v576_v19, 0.0  ;;  %v1155_v19 = vld [vmem:[#allocation2 + $0x180] sm:$0xff] }
 0x1f2   :  { %v649_v32 = vmax.f32 %v571_v25, 0.0  ;;  %v2819_v25 = vpack.c.bf16 %v1238_v23, %v1237_v54  ;;  %v1566_v54 = vld [vmem:[#allocation2 + $0x2c8] sm:$0xff] }
 0x1f3   :  { %2388 = vmatmul.mubr.msk.f32.vlgmr.msra.gmra.mrb[16].mxu0 %vm419_vm1, %v650_v26  ;;  %v2807_v26 = vpack.c.bf16 %v1156_v24, %v1155_v19  ;;  %v1484_v19 = vld [vmem:[#allocation2 + $0x288] sm:$0xff] }
 0x1f4   :  { %2407 = vmatmul.mubr.msk.f32.vlgmr.msra.gmra.mrb[0].mxu1 %vm419_vm1, %v649_v32  ;;  %2772 = vmatpush3.bf16.msra.mxu0 %v2771_v49 }
 0x1f5   :  { %2760 = vmatpush3.bf16.msra.mxu1 %v2759_v27  ;;  %2773 = vmatprep.subr.bf16.mxu0 %v3016_v15  ;;  %v1239_v27 = vld [vmem:[#allocation2 + $0x1d0] sm:$0xff] }
 0x1f6   :  { %2761 = vmatprep.subr.bf16.mxu1 %v3016_v15  ;;  %2444 = vmatprep.mubr.msk.f32.mxu0 %vm3018_vm3, %v3017_v45 }
 0x1f7   :  { %2425 = vmatprep.mubr.msk.f32.mxu1 %vm3018_vm3, %v3017_v45 }
 0x1f8   :  { %2775 = vmatpush3.bf16.msra.mxu0 %v2774_v37 }
 0x1f9   :  { %2763 = vmatpush3.bf16.msra.mxu1 %v2762_v38  ;;  %2776 = vmatprep.subr.bf16.mxu0 %v3016_v15  ;;  %v2822_v38 = vpack.c.bf16 %v1240_v30, %v1239_v27  ;;  %v1568_v27 = vld [vmem:[#allocation2 + $0x2d8] sm:$0xff] }
 0x1fa   :  { %2764 = vmatprep.subr.bf16.mxu1 %v3016_v15 }
 0x1fc   :  { %2778 = vmatpush3.bf16.msra.mxu0 %v2777_v43  ;;  %v1160_v43 = vld [vmem:[#allocation2 + $0x1a8] sm:$0xff] }
 0x1fd   :  { %2766 = vmatpush3.bf16.msra.mxu1 %v2765_v42  ;;  %2779 = vmatprep.subr.bf16.mxu0 %v3016_v15  ;;  %v2825_v42 = vpack.c.bf16 %v1242_v41, %v1241_v40  ;;  %v2813_v51 = vpack.c.bf16 %v1160_v43, %v1159_v0  ;;  %v1488_v40 = vld [vmem:[#allocation2 + $0x2a8] sm:$0xff]  ;;  %v1571_v43 = vld [vmem:[#allocation2 + $0x2f0] sm:$0xff] }
 0x1fe   :  { %2767 = vmatprep.subr.bf16.mxu1 %v3016_v15 }
 0x200   :  { %2781 = vmatpush3.bf16.msra.mxu0 %v2780_v50  ;;  %v1161_v50 = vld [vmem:[#allocation2 + $0x1b0] sm:$0xff] }
 0x201   :  { %2769 = vmatpush3.bf16.msra.mxu1 %v2768_v5  ;;  %2794 = vmatprep.subr.bf16.mxu0 %v3016_v15  ;;  %v1162_v5 = vld [vmem:[#allocation2 + $0x1b8] sm:$0xff] }
 0x202   :  { %2782 = vmatprep.subr.bf16.mxu1 %v3016_v15  ;;  %v2816_v56 = vpack.c.bf16 %v1162_v5, %v1161_v50  ;;  %v1729_v50 = vld [vmem:[#allocation2 + $0x340] sm:$0xff]  ;;  %v1730_v5 = vld [vmem:[#allocation2 + $0x348] sm:$0xff] }
 0x207   :  { %v2352_v55 = vpop.f32.mrb[2].mxu0 }
 0x208   :  { %v586_v61 = vadd.f32 %v2352_v55, %v3425_v8  ;;  %v580_v59 = vpop.f32.mrb[3].mxu0 }
 0x209   :  { %v581_v1 = vadd.f32 %v3425_v8, %v580_v59 }
 0x20a   :  { %v652_v62 = vmax.f32 %v586_v61, 0.0  ;;  %v1402_v61 = vld [vmem:[#allocation2 + $0x248] sm:$0xff] }
 0x20b   :  { %v651_v6 = vmax.f32 %v581_v1, 0.0  ;;  %v1319_v1 = vld [vmem:[#allocation2 + $0x200] sm:$0xff] }
 0x20c   :  { %2445 = vmatmul.mubr.msk.f32.vlgmr.msra.gmra.mrb[18].mxu0 %vm419_vm1, %v652_v62  ;;  %v2843_v62 = vpack.c.bf16 %v1402_v61, %v1401_v57 }
 0x20d   :  { %2796 = vmatpush3.bf16.msra.mxu0 %v2795_v60  ;;  %2426 = vmatmul.mubr.msk.f32.vlgmr.msra.gmra.mrb[2].mxu1 %vm419_vm1, %v651_v6  ;;  %v1320_v60 = vld [vmem:[#allocation2 + $0x208] sm:$0xff]  ;;  %v1404_v6 = vld [vmem:[#allocation2 + $0x258] sm:$0xff] }
 0x20e   :  { %2784 = vmatpush3.bf16.msra.mxu1 %v2783_v63  ;;  %2797 = vmatprep.subr.bf16.mxu0 %v3016_v15  ;;  %v2831_v2 = vpack.c.bf16 %v1320_v60, %v1319_v1 }
 0x20f   :  { %2785 = vmatprep.subr.bf16.mxu1 %v3016_v15  ;;  %2482 = vmatprep.mubr.msk.f32.mxu0 %vm3018_vm3, %v3017_v45 }
 0x210   :  { %2463 = vmatprep.mubr.msk.f32.mxu1 %vm3018_vm3, %v3017_v45 }
 0x211   :  { %2799 = vmatpush3.bf16.msra.mxu0 %v2798_v10  ;;  %v1322_v10 = vld [vmem:[#allocation2 + $0x218] sm:$0xff] }
 0x212   :  { %2787 = vmatpush3.bf16.msra.mxu1 %v2786_v11  ;;  %2800 = vmatprep.subr.bf16.mxu0 %v3016_v15  ;;  %v2846_v11 = vpack.c.bf16 %v1404_v6, %v1403_v3  ;;  %v2834_v4 = vpack.c.bf16 %v1322_v10, %v1321_v9  ;;  %v1649_v3 = vld [vmem:[#allocation2 + $0x310] sm:$0xff]  ;;  %v1650_v6 = vld [vmem:[#allocation2 + $0x318] sm:$0xff]  ;;  %v1733_v10 = vld [vmem:[#allocation2 + $0x360] sm:$0xff] }
 0x213   :  { %v2355_v33 = vpop.f32.mrb[4].mxu0  ;;  %2788 = vmatprep.subr.bf16.mxu1 %v3016_v15  ;;  %v2882_v9 = vpack.c.bf16 %v1650_v6, %v1649_v3 }
 0x214   :  { %v590_v20 = vpop.f32.mrb[5].mxu0  ;;  %v596_v21 = vadd.f32 %v2355_v33, %v3425_v8  ;;  %v1408_v33 = vld [vmem:[#allocation2 + $0x278] sm:$0xff] }
 0x215   :  { %2802 = vmatpush3.bf16.msra.mxu0 %v2801_v7  ;;  %v591_v58 = vadd.f32 %v3425_v8, %v590_v20  ;;  %v1324_v7 = vld [vmem:[#allocation2 + $0x228] sm:$0xff]  ;;  %v2852_v20 = vpack.c.bf16 %v1408_v33, %v1407_v16  ;;  %v1653_v16 = vld [vmem:[#allocation2 + $0x330] sm:$0xff]  ;;  %v1654_v33 = vld [vmem:[#allocation2 + $0x338] sm:$0xff] }
 0x216   :  { %2790 = vmatpush3.bf16.msra.mxu1 %v2789_v13  ;;  %2803 = vmatprep.subr.bf16.mxu0 %v3016_v15  ;;  %v654_v49 = vmax.f32 %v596_v21, 0.0  ;;  %v2849_v13 = vpack.c.bf16 %v1406_v34, %v1405_v29  ;;  %v2837_v14 = vpack.c.bf16 %v1324_v7, %v1323_v12  ;;  %v2840_v21 = vpack.c.bf16 %v1326_v18, %v1325_v17  ;;  %v1652_v29 = vld [vmem:[#allocation2 + $0x328] sm:$0xff]  ;;  %v1735_v7 = vld [vmem:[#allocation2 + $0x370] sm:$0xff] }
 0x217   :  { %2791 = vmatprep.subr.bf16.mxu1 %v3016_v15  ;;  %v653_v31 = vmax.f32 %v591_v58, 0.0  ;;  %v1483_v58 = vld [vmem:[#allocation2 + $0x280] sm:$0xff] }
 0x219   :  { %2805 = vmatpush3.bf16.msra.mxu0 %v2804_v44 }
 0x21a   :  { %2793 = vmatpush3.bf16.msra.mxu1 %v2792_v22  ;;  %2818 = vmatprep.subr.bf16.mxu0 %v3016_v15  ;;  %v1565_v22 = vld [vmem:[#allocation2 + $0x2c0] sm:$0xff] }
 0x21b   :  { %v2358_v32 = vpop.f32.mrb[6].mxu0  ;;  %2806 = vmatprep.subr.bf16.mxu1 %v3016_v15  ;;  %v2867_v24 = vpack.c.bf16 %v1566_v54, %v1565_v22  ;;  %v1894_v22 = vld [vmem:[#allocation2 + $0x3c8] sm:$0xff] }
 0x21c   :  { %2483 = vmatmul.mubr.msk.f32.vlgmr.msra.gmra.mrb[20].mxu0 %vm419_vm1, %v654_v49  ;;  %v600_v37 = vpop.f32.mrb[7].mxu0  ;;  %v606_v55 = vadd.f32 %v2358_v32, %v3425_v8  ;;  %v2855_v49 = vpack.c.bf16 %v1484_v19, %v1483_v58  ;;  %v1486_v32 = vld [vmem:[#allocation2 + $0x298] sm:$0xff]  ;;  %v1812_v58 = vld [vmem:[#allocation2 + $0x388] sm:$0xff] }
 0x21d   :  { %2464 = vmatmul.mubr.msk.f32.vlgmr.msra.gmra.mrb[4].mxu1 %vm419_vm1, %v653_v31  ;;  %2820 = vmatpush3.bf16.msra.mxu0 %v2819_v25  ;;  %v601_v59 = vadd.f32 %v3425_v8, %v600_v37  ;;  %v1485_v31 = vld [vmem:[#allocation2 + $0x290] sm:$0xff]  ;;  %v1569_v37 = vld [vmem:[#allocation2 + $0x2e0] sm:$0xff] }
 0x21e   :  { %2808 = vmatpush3.bf16.msra.mxu1 %v2807_v26  ;;  %2821 = vmatprep.subr.bf16.mxu0 %v3016_v15  ;;  %v656_v63 = vmax.f32 %v606_v55, 0.0  ;;  %v1567_v26 = vld [vmem:[#allocation2 + $0x2d0] sm:$0xff]  ;;  %v2858_v36 = vpack.c.bf16 %v1486_v32, %v1485_v31  ;;  %v1648_v55 = vld [vmem:[#allocation2 + $0x308] sm:$0xff]  ;;  %v1814_v32 = vld [vmem:[#allocation2 + $0x398] sm:$0xff] }
 0x21f   :  { %2809 = vmatprep.subr.bf16.mxu1 %v3016_v15  ;;  %2520 = vmatprep.mubr.msk.f32.mxu0 %vm3018_vm3, %v3017_v45  ;;  %v655_v28 = vmax.f32 %v601_v59, 0.0  ;;  %v2870_v35 = vpack.c.bf16 %v1568_v27, %v1567_v26  ;;  %v2891_v59 = vpack.c.bf16 %v1730_v5, %v1729_v50  ;;  %v1896_v26 = vld [vmem:[#allocation2 + $0x3d8] sm:$0xff]  ;;  %v1813_v31 = vld [vmem:[#allocation2 + $0x390] sm:$0xff] }
 0x220   :  { %2501 = vmatprep.mubr.msk.f32.mxu1 %vm3018_vm3, %v3017_v45 }
 0x221   :  { %2823 = vmatpush3.bf16.msra.mxu0 %v2822_v38  ;;  %v1570_v38 = vld [vmem:[#allocation2 + $0x2e8] sm:$0xff] }
 0x222   :  { %2811 = vmatpush3.bf16.msra.mxu1 %v2810_v39  ;;  %2824 = vmatprep.subr.bf16.mxu0 %v3016_v15  ;;  %v1487_v39 = vld [vmem:[#allocation2 + $0x2a0] sm:$0xff]  ;;  %v2873_v41 = vpack.c.bf16 %v1570_v38, %v1569_v37  ;;  %v2906_v37 = vpack.c.bf16 %v1814_v32, %v1813_v31 }
 0x223   :  { %v2361_v48 = vpop.f32.mrb[8].mxu0  ;;  %2812 = vmatprep.subr.bf16.mxu1 %v3016_v15  ;;  %v2861_v0 = vpack.c.bf16 %v1488_v40, %v1487_v39  ;;  %v1897_v38 = vld [vmem:[#allocation2 + $0x3e0] sm:$0xff]  ;;  %v1898_v39 = vld [vmem:[#allocation2 + $0x3e8] sm:$0xff] }
 0x224   :  { %v610_v52 = vpop.f32.mrb[9].mxu0  ;;  %v616_v44 = vadd.f32 %v2361_v48, %v3425_v8  ;;  %v1815_v40 = vld [vmem:[#allocation2 + $0x3a0] sm:$0xff] }
 0x225   :  { %2826 = vmatpush3.bf16.msra.mxu0 %v2825_v42  ;;  %v611_v23 = vadd.f32 %v3425_v8, %v610_v52  ;;  %v1572_v42 = vld [vmem:[#allocation2 + $0x2f8] sm:$0xff] }
 0x226   :  { %2814 = vmatpush3.bf16.msra.mxu1 %v2813_v51  ;;  %2827 = vmatprep.subr.bf16.mxu0 %v3016_v15  ;;  %v658_v25 = vmax.f32 %v616_v44, 0.0  ;;  %v1489_v51 = vld [vmem:[#allocation2 + $0x2b0] sm:$0xff]  ;;  %v2876_v47 = vpack.c.bf16 %v1572_v42, %v1571_v43  ;;  %v2888_v44 = vpack.c.bf16 %v1654_v33, %v1653_v16  ;;  %v1993_v16 = vld [vmem:[%s3624_s7 + $0x48] sm:$0xff] }
 0x227   :  { %2815 = vmatprep.subr.bf16.mxu1 %v3016_v15  ;;  %v657_v30 = vmax.f32 %v611_v23, 0.0  ;;  %v2864_v48 = vpack.c.bf16 %v1490_v46, %v1489_v51  ;;  %v1811_v23 = vld [vmem:[#allocation2 + $0x380] sm:$0xff]  ;;  %v1899_v42 = vld [vmem:[#allocation2 + $0x3f0] sm:$0xff]  ;;  %v1900_v51 = vld [vmem:[#allocation2 + $0x3f8] sm:$0xff] }
 0x228   :  { %v1817_v46 = vld [vmem:[#allocation2 + $0x3b0] sm:$0xff] }
 0x229   :  { %2829 = vmatpush3.bf16.msra.mxu0 %v2828_v53  ;;  %v1647_v53 = vld [vmem:[#allocation2 + $0x300] sm:$0xff] }
 0x22a   :  { %2817 = vmatpush3.bf16.msra.mxu1 %v2816_v56  ;;  %2842 = vmatprep.subr.bf16.mxu0 %v3016_v15  ;;  %v2879_v60 = vpack.c.bf16 %v1648_v55, %v1647_v53 }
 0x22b   :  { %2830 = vmatprep.subr.bf16.mxu1 %v3016_v15 }
 0x22c   :  { %2521 = vmatmul.mubr.msk.f32.vlgmr.msra.gmra.mrb[22].mxu0 %vm419_vm1, %v656_v63  ;;  %v1732_v63 = vld [vmem:[#allocation2 + $0x358] sm:$0xff] }
 0x22d   :  { %2502 = vmatmul.mubr.msk.f32.vlgmr.msra.gmra.mrb[6].mxu1 %vm419_vm1, %v655_v28  ;;  %2844 = vmatpush3.bf16.msra.mxu0 %v2843_v62  ;;  %v1731_v62 = vld [vmem:[#allocation2 + $0x350] sm:$0xff] }
 0x22e   :  { %2832 = vmatpush3.bf16.msra.mxu1 %v2831_v2  ;;  %2845 = vmatprep.subr.bf16.mxu0 %v3016_v15  ;;  %v2894_v28 = vpack.c.bf16 %v1732_v63, %v1731_v62  ;;  %v1986_v62 = vld [vmem:[%s3624_s7 + $0x10] sm:$0xff] }
 0x22f   :  { %2833 = vmatprep.subr.bf16.mxu1 %v3016_v15  ;;  %2558 = vmatprep.mubr.msk.f32.mxu0 %vm3018_vm3, %v3017_v45 }
 0x230   :  { %2539 = vmatprep.mubr.msk.f32.mxu1 %vm3018_vm3, %v3017_v45 }
 0x231   :  { %2847 = vmatpush3.bf16.msra.mxu0 %v2846_v11  ;;  %v1734_v11 = vld [vmem:[#allocation2 + $0x368] sm:$0xff] }
 0x232   :  { %2835 = vmatpush3.bf16.msra.mxu1 %v2834_v4  ;;  %2848 = vmatprep.subr.bf16.mxu0 %v3016_v15  ;;  %v1651_v4 = vld [vmem:[#allocation2 + $0x320] sm:$0xff]  ;;  %v2897_v34 = vpack.c.bf16 %v1734_v11, %v1733_v10 }
 0x233   :  { %2836 = vmatprep.subr.bf16.mxu1 %v3016_v15  ;;  %v2885_v12 = vpack.c.bf16 %v1652_v29, %v1651_v4  ;;  %v1988_v4 = vld [vmem:[%s3624_s7 + $0x20] sm:$0xff]  ;;  %v1989_v29 = vld [vmem:[%s3624_s7 + $0x28] sm:$0xff] }
 0x235   :  { %2850 = vmatpush3.bf16.msra.mxu0 %v2849_v13  ;;  %v1736_v13 = vld [vmem:[#allocation2 + $0x378] sm:$0xff] }
 0x236   :  { %2838 = vmatpush3.bf16.msra.mxu1 %v2837_v14  ;;  %2851 = vmatprep.subr.bf16.mxu0 %v3016_v15  ;;  %v2900_v18 = vpack.c.bf16 %v1736_v13, %v1735_v7  ;;  %v1991_v7 = vld [vmem:[%s3624_s7 + $0x38] sm:$0xff] }
 0x237   :  { %2839 = vmatprep.subr.bf16.mxu1 %v3016_v15 }
 0x239   :  { %2853 = vmatpush3.bf16.msra.mxu0 %v2852_v20 }
 0x23a   :  { %2841 = vmatpush3.bf16.msra.mxu1 %v2840_v21  ;;  %2866 = vmatprep.subr.bf16.mxu0 %v3016_v15  ;;  %v1893_v21 = vld [vmem:[#allocation2 + $0x3c0] sm:$0xff] }
 0x23b   :  { %2854 = vmatprep.subr.bf16.mxu1 %v3016_v15  ;;  %v2915_v19 = vpack.c.bf16 %v1894_v22, %v1893_v21 }
 0x23c   :  { %2559 = vmatmul.mubr.msk.f32.vlgmr.msra.gmra.mrb[24].mxu0 %vm419_vm1, %v658_v25  ;;  %v2903_v25 = vpack.c.bf16 %v1812_v58, %v1811_v23 }
 0x23d   :  { %2540 = vmatmul.mubr.msk.f32.vlgmr.msra.gmra.mrb[8].mxu1 %vm419_vm1, %v657_v30  ;;  %2868 = vmatpush3.bf16.msra.mxu0 %v2867_v24 }
 0x23e   :  { %2856 = vmatpush3.bf16.msra.mxu1 %v2855_v49  ;;  %2869 = vmatprep.subr.bf16.mxu0 %v3016_v15  ;;  %v1895_v49 = vld [vmem:[#allocation2 + $0x3d0] sm:$0xff] }
 0x23f   :  { %2857 = vmatprep.subr.bf16.mxu1 %v3016_v15  ;;  %2596 = vmatprep.mubr.msk.f32.mxu0 %vm3018_vm3, %v3017_v45 }
 0x240   :  { %2577 = vmatprep.mubr.msk.f32.mxu1 %vm3018_vm3, %v3017_v45 }
 0x241   :  { %2871 = vmatpush3.bf16.msra.mxu0 %v2870_v35 }
 0x242   :  { %2859 = vmatpush3.bf16.msra.mxu1 %v2858_v36  ;;  %2872 = vmatprep.subr.bf16.mxu0 %v3016_v15  ;;  %v2918_v36 = vpack.c.bf16 %v1896_v26, %v1895_v49  ;;  %v1998_v49 = vld [vmem:[%s3624_s7 + $0x70] sm:$0xff]  ;;  %v1999_v26 = vld [vmem:[%s3624_s7 + $0x78] sm:$0xff] }
 0x243   :  { %2860 = vmatprep.subr.bf16.mxu1 %v3016_v15 }
 0x245   :  { %2874 = vmatpush3.bf16.msra.mxu0 %v2873_v41  ;;  %v1816_v41 = vld [vmem:[#allocation2 + $0x3a8] sm:$0xff] }
 0x246   :  { %2862 = vmatpush3.bf16.msra.mxu1 %v2861_v0  ;;  %2875 = vmatprep.subr.bf16.mxu0 %v3016_v15  ;;  %v2921_v0 = vpack.c.bf16 %v1898_v39, %v1897_v38  ;;  %v2909_v43 = vpack.c.bf16 %v1816_v41, %v1815_v40 }
 0x247   :  { %2863 = vmatprep.subr.bf16.mxu1 %v3016_v15 }
 0x249   :  { %2877 = vmatpush3.bf16.msra.mxu0 %v2876_v47  ;;  %v1818_v47 = vld [vmem:[#allocation2 + $0x3b8] sm:$0xff] }
 0x24a   :  { %2865 = vmatpush3.bf16.msra.mxu1 %v2864_v48  ;;  %2890 = vmatprep.subr.bf16.mxu0 %v3016_v15  ;;  %v2924_v48 = vpack.c.bf16 %v1900_v51, %v1899_v42  ;;  %v2912_v5 = vpack.c.bf16 %v1818_v47, %v1817_v46 }
 0x24b   :  { %2878 = vmatprep.subr.bf16.mxu1 %v3016_v15 }
 0x27c   :  { %v2364_v52 = vpop.f32.mrb[10].mxu0 }
 0x27d   :  { %v626_v56 = vadd.f32 %v2364_v52, %v3425_v8  ;;  %v620_v57 = vpop.f32.mrb[11].mxu0 }
 0x27e   :  { %v621_v61 = vadd.f32 %v3425_v8, %v620_v57 }
 0x27f   :  { %v660_v1 = vmax.f32 %v626_v56, 0.0 }
 0x280   :  { %v659_v2 = vmax.f32 %v621_v61, 0.0 }
 0x281   :  { %2597 = vmatmul.mubr.msk.f32.vlgmr.msra.gmra.mrb[26].mxu0 %vm419_vm1, %v660_v1  ;;  %v1984_v1 = vld [vmem:[%s3624_s7] sm:$0xff] }
 0x282   :  { %2892 = vmatpush3.bf16.msra.mxu0 %v2891_v59  ;;  %2578 = vmatmul.mubr.msk.f32.vlgmr.msra.gmra.mrb[10].mxu1 %vm419_vm1, %v659_v2 }
 0x283   :  { %2880 = vmatpush3.bf16.msra.mxu1 %v2879_v60  ;;  %2893 = vmatprep.subr.bf16.mxu0 %v3016_v15  ;;  %v1985_v60 = vld [vmem:[%s3624_s7 + $0x8] sm:$0xff] }
 0x284   :  { %2881 = vmatprep.subr.bf16.mxu1 %v3016_v15  ;;  %2634 = vmatprep.mubr.msk.f32.mxu0 %vm3018_vm3, %v3017_v45  ;;  %v2927_v63 = vpack.c.bf16 %v1985_v60, %v1984_v1  ;;  %v2132_v60 = vld [vmem:[%s3623_s6] ss:$0 sm:$0xff] }
 0x285   :  { %2615 = vmatprep.mubr.msk.f32.mxu1 %vm3018_vm3, %v3017_v45 }
 0x286   :  { %2895 = vmatpush3.bf16.msra.mxu0 %v2894_v28 }
 0x287   :  { %2883 = vmatpush3.bf16.msra.mxu1 %v2882_v9  ;;  %2896 = vmatprep.subr.bf16.mxu0 %v3016_v15 }
 0x288   :  { %v2367_v14 = vpop.f32.mrb[12].mxu0  ;;  %2884 = vmatprep.subr.bf16.mxu1 %v3016_v15 }
 0x289   :  { %v630_v17 = vpop.f32.mrb[13].mxu0  ;;  %v636_v20 = vadd.f32 %v2367_v14, %v3425_v8  ;;  %v1992_v14 = vld [vmem:[%s3624_s7 + $0x40] sm:$0xff] }
 0x28a   :  { %2898 = vmatpush3.bf16.msra.mxu0 %v2897_v34  ;;  %v631_v54 = vadd.f32 %v3425_v8, %v630_v17  ;;  %v2933_v34 = vpack.c.bf16 %v1989_v29, %v1988_v4  ;;  %v2939_v33 = vpack.c.bf16 %v1993_v16, %v1992_v14  ;;  %v1994_v17 = vld [vmem:[%s3624_s7 + $0x50] sm:$0xff] }
 0x28b   :  { %2886 = vmatpush3.bf16.msra.mxu1 %v2885_v12  ;;  %2899 = vmatprep.subr.bf16.mxu0 %v3016_v15  ;;  %v662_v24 = vmax.f32 %v636_v20, 0.0  ;;  %v1990_v12 = vld [vmem:[%s3624_s7 + $0x30] sm:$0xff] }
 0x28c   :  { %2887 = vmatprep.subr.bf16.mxu1 %v3016_v15  ;;  %v661_v27 = vmax.f32 %v631_v54, 0.0  ;;  %v2936_v13 = vpack.c.bf16 %v1991_v7, %v1990_v12 }
 0x28e   :  { %2901 = vmatpush3.bf16.msra.mxu0 %v2900_v18  ;;  %v1995_v18 = vld [vmem:[%s3624_s7 + $0x58] sm:$0xff] }
 0x28f   :  { %2889 = vmatpush3.bf16.msra.mxu1 %v2888_v44  ;;  %2914 = vmatprep.subr.bf16.mxu0 %v3016_v15  ;;  %v2942_v22 = vpack.c.bf16 %v1995_v18, %v1994_v17 }
 0x290   :  { %v2370_v30 = vpop.f32.mrb[14].mxu0  ;;  %2902 = vmatprep.subr.bf16.mxu1 %v3016_v15 }
 0x291   :  { %2635 = vmatmul.mubr.msk.f32.vlgmr.msra.gmra.mrb[28].mxu0 %vm419_vm1, %v662_v24  ;;  %v640_v35 = vpop.f32.mrb[15].mxu0  ;;  %v646_v50 = vadd.f32 %v2370_v30, %v3425_v8  ;;  %v1997_v24 = vld [vmem:[%s3624_s7 + $0x68] sm:$0xff] }
 0x292   :  { %2616 = vmatmul.mubr.msk.f32.vlgmr.msra.gmra.mrb[12].mxu1 %vm419_vm1, %v661_v27  ;;  %2916 = vmatpush3.bf16.msra.mxu0 %v2915_v19  ;;  %v641_v52 = vadd.f32 %v3425_v8, %v640_v35  ;;  %v1996_v19 = vld [vmem:[%s3624_s7 + $0x60] sm:$0xff]  ;;  %v2948_v27 = vpack.c.bf16 %v1999_v26, %v1998_v49 }
 0x293   :  { %2904 = vmatpush3.bf16.msra.mxu1 %v2903_v25  ;;  %2917 = vmatprep.subr.bf16.mxu0 %v3016_v15  ;;  %v664_v53 = vmax.f32 %v646_v50, 0.0  ;;  %v2945_v25 = vpack.c.bf16 %v1997_v24, %v1996_v19 }
 0x294   :  { %2905 = vmatprep.subr.bf16.mxu1 %v3016_v15  ;;  %2672 = vmatprep.mubr.msk.f32.mxu0 %vm3018_vm3, %v3017_v45  ;;  %v663_v55 = vmax.f32 %v641_v52, 0.0 }
 0x295   :  { %2653 = vmatprep.mubr.msk.f32.mxu1 %vm3018_vm3, %v3017_v45 }
 0x296   :  { %2919 = vmatpush3.bf16.msra.mxu0 %v2918_v36 }
 0x297   :  { %2907 = vmatpush3.bf16.msra.mxu1 %v2906_v37  ;;  %2920 = vmatprep.subr.bf16.mxu0 %v3016_v15 }
 0x298   :  { %2908 = vmatprep.subr.bf16.mxu1 %v3016_v15 }
 0x29a   :  { %2922 = vmatpush3.bf16.msra.mxu0 %v2921_v0 }
 0x29b   :  { %2910 = vmatpush3.bf16.msra.mxu1 %v2909_v43  ;;  %2923 = vmatprep.subr.bf16.mxu0 %v3016_v15 }
 0x29c   :  { %2911 = vmatprep.subr.bf16.mxu1 %v3016_v15 }
 0x29e   :  { %2925 = vmatpush3.bf16.msra.mxu0 %v2924_v48 }
 0x29f   :  { %2913 = vmatpush3.bf16.msra.mxu1 %v2912_v5 }
 0x2a0   :  { %2926 = vmatprep.subr.bf16.mxu1 %v3016_v15 }
 0x2a1   :  { %2673 = vmatmul.mubr.msk.f32.vlgmr.msra.gmra.mrb[30].mxu0 %vm419_vm1, %v664_v53 }
 0x2a2   :  { %2654 = vmatmul.mubr.msk.f32.vlgmr.msra.gmra.mrb[14].mxu1 %vm419_vm1, %v663_v55 }
 0x2a3   :  { %2707 = vmatprep.mubr.msk.f32.mxu1 %vm3018_vm3, %v3017_v45  ;;  %v1987_v45 = vld [vmem:[%s3624_s7 + $0x18] sm:$0xff]  ;;  %2928 = vmatpush3.bf16.msra.mxu1 %v2927_v63 }
 0x2a4   :  { %v2930_v2 = vpack.c.bf16 %v1987_v45, %v1986_v62  ;;  %2929 = vmatprep.subr.bf16.mxu1 %v3016_v15 }
 0x2a7   :  { %2931 = vmatpush3.bf16.msra.mxu1 %v2930_v2  ;;  %v2133_v2 = vld [vmem:[%s3625_s8] ss:$0 sm:$0xff] }
 0x2a8   :  { %2932 = vmatprep.subr.bf16.mxu1 %v3016_v15 }
 0x2ab   :  { %2934 = vmatpush3.bf16.msra.mxu1 %v2933_v34 }
 0x2ac   :  { %2935 = vmatprep.subr.bf16.mxu1 %v3016_v15 }
 0x2af   :  { %2937 = vmatpush3.bf16.msra.mxu1 %v2936_v13 }
 0x2b0   :  { %2938 = vmatprep.subr.bf16.mxu1 %v3016_v15 }
 0x2b3   :  { %2940 = vmatpush3.bf16.msra.mxu1 %v2939_v33 }
 0x2b4   :  { %2941 = vmatprep.subr.bf16.mxu1 %v3016_v15 }
 0x2b7   :  { %2943 = vmatpush3.bf16.msra.mxu1 %v2942_v22 }
 0x2b8   :  { %2944 = vmatprep.subr.bf16.mxu1 %v3016_v15 }
 0x2bb   :  { %2946 = vmatpush3.bf16.msra.mxu1 %v2945_v25 }
 0x2bc   :  { %2947 = vmatprep.subr.bf16.mxu1 %v3016_v15 }
 0x2bf   :  { %2949 = vmatpush3.bf16.msra.mxu1 %v2948_v27 }
 0x2c6   :  { %v750_v56 = vpop.f32.mrb[16].mxu0 }
 0x2c7   :  { %v2389_v57 = vpop.f32.mrb[17].mxu0  ;;  %v823_v61 = vpop.f32.mrb[0].mxu1 }
 0x2c8   :  { %v824_v59 = vadd.f32 %v823_v61, %v750_v56  ;;  %v2408_v8 = vpop.f32.mrb[1].mxu1 }
 0x2df   :  { %v986_v3 = vpop.f32.mrb[18].mxu0 }
 0x2e0   :  { %v904_v6 = vpop.f32.mrb[2].mxu1  ;;  %v2446_v28 = vpop.f32.mrb[19].mxu0 }
 0x2e1   :  { %v908_v9 = vadd.f32 %v904_v6, %v824_v59  ;;  %v2427_v10 = vpop.f32.mrb[3].mxu1 }
 0x2e3   :  { %v990_v11 = vadd.f32 %v986_v3, %v908_v9 }
 0x2ef   :  { %v1150_v20 = vpop.f32.mrb[20].mxu0 }
 0x2f0   :  { %v1068_v44 = vpop.f32.mrb[4].mxu1  ;;  %v2484_v21 = vpop.f32.mrb[21].mxu0 }
 0x2f1   :  { %v1072_v54 = vadd.f32 %v1068_v44, %v990_v11  ;;  %v2465_v23 = vpop.f32.mrb[5].mxu1 }
 0x2f3   :  { %v1154_v58 = vadd.f32 %v1150_v20, %v1072_v54 }
 0x2ff   :  { %v1314_v30 = vpop.f32.mrb[22].mxu0 }
 0x300   :  { %v1232_v31 = vpop.f32.mrb[6].mxu1  ;;  %v2522_v32 = vpop.f32.mrb[23].mxu0 }
 0x301   :  { %v1236_v35 = vadd.f32 %v1232_v31, %v1154_v58  ;;  %v2503_v36 = vpop.f32.mrb[7].mxu1 }
 0x303   :  { %v1318_v37 = vadd.f32 %v1314_v30, %v1236_v35 }
 0x30f   :  { %v1478_v38 = vpop.f32.mrb[24].mxu0 }
 0x310   :  { %v1396_v39 = vpop.f32.mrb[8].mxu1  ;;  %v2560_v40 = vpop.f32.mrb[25].mxu0 }
 0x311   :  { %v1400_v15 = vadd.f32 %v1396_v39, %v1318_v37  ;;  %v2541_v41 = vpop.f32.mrb[9].mxu1 }
 0x313   :  { %v1482_v0 = vadd.f32 %v1478_v38, %v1400_v15 }
 0x354   :  { %v1642_v43 = vpop.f32.mrb[26].mxu0 }
 0x355   :  { %v1560_v42 = vpop.f32.mrb[10].mxu1  ;;  %v2598_v51 = vpop.f32.mrb[27].mxu0 }
 0x356   :  { %v1564_v46 = vadd.f32 %v1560_v42, %v1482_v0  ;;  %v2579_v47 = vpop.f32.mrb[11].mxu1 }
 0x358   :  { %v1646_v48 = vadd.f32 %v1642_v43, %v1564_v46 }
 0x364   :  { %v1806_v50 = vpop.f32.mrb[28].mxu0 }
 0x365   :  { %v1724_v5 = vpop.f32.mrb[12].mxu1  ;;  %v2636_v52 = vpop.f32.mrb[29].mxu0 }
 0x366   :  { %v1728_v53 = vadd.f32 %v1724_v5, %v1646_v48  ;;  %v2617_v55 = vpop.f32.mrb[13].mxu1 }
 0x368   :  { %v1810_v56 = vadd.f32 %v1806_v50, %v1728_v53 }
 0x374   :  { %v1970_v57 = vpop.f32.mrb[30].mxu0 }
 0x375   :  { %v1888_v61 = vpop.f32.mrb[14].mxu1  ;;  %v2674_v59 = vpop.f32.mrb[31].mxu0 }
 0x376   :  { %v1892_v8 = vadd.f32 %v1888_v61, %v1810_v56  ;;  %v2655_v1 = vpop.f32.mrb[15].mxu1 }
 0x378   :  { %v1974_v62 = vadd.f32 %v1970_v57, %v1892_v8 }
 0x37a   :  { %v1982_v63 = vadd.f32 %v2132_v60, %v1974_v62 }
 0x37c   :  { %v1983_v45 = vmax.f32 %v1982_v63, 0.0 }
 0x37e   :  { %2708 = vmatmul.mubr.f32.vlgmr.msra.gmra.mrb[16].mxu1 %v1983_v45 }
 0x451   :  { %v2073_v3 = vpop.f32.mrb[16].mxu1 }
 0x452   :  { %v2074_v6 = vadd.f32 %v2133_v2, %v2073_v3  ;;  %v2709_v28 = vpop.f32.mrb[17].mxu1 }
 0x454   :  { %2077 = vst [vmem:[#allocation5] sm:$0xff] %v2074_v6 }
 0x455   :  { %2995 = shalt.err (!%p2992_p12)
}
 0x456   :  { %s2996_s10 = scalar_lea.hbm %s3626_s9, 128 }
 0x457   :  { %p2997_p13 = scmp.ne.s32.totalorder %s3626_s9, %s2996_s10  ;;  %p3000_p0 = scmp.lt.u32.totalorder %s2996_s10, %s3626_s9 }
 0x459   :  { %p3002_p1 = pnand %p3000_p0, %p2997_p13 }
 0x45b   :  { %3005 = shalt.err (!%p3002_p1)
}
 0x45c   :  { %2087 = dma.vmem_to_hbm [thread:$0]  %s2085_s5, 128, %s3626_s9, [#allocation4]  }
 0x45d   :  { %3008 = dma.done.wait [#allocation4], 128  }
 0x45e   :  { %3009 = vsyncadd [#allocation4], 4294967168 }
 0x45f   :  { %2091 = vsyncpa [#allocation3], 1 }
 0x460   :  { %2092 = vsyncpa [#allocation4], 1 }

</bundles_post_ra>
